<compile_context>
chip_gen: v5e
topology: v5e:2x2
jax: 0.10.0
libtpu: 0.0.40
codegen_flags: <defaults>
</compile_context>

<pallas_src>
import jax
import jax.numpy as jnp
from jax.experimental import pallas as pl
from jax.experimental.pallas import tpu as pltpu

LANES = 128   # TPU vreg lane width
TILE_B = 128  # batch rows per grid step


def pack_params(w1_pt, b1, w2_pt, b2, lanes=LANES):
    """Pack all Net parameters into one lane-aligned f32 slab.

    Inputs use PyTorch layouts:
      w1_pt: (hidden, n_states)   b1: (hidden,)
      w2_pt: (n_actions, hidden)  b2: (n_actions,)

    Slab row layout (each row is `lanes` wide, zero padded):
      rows [0, n_states)                  : W1^T row k  -> lanes [0, hidden)
      row  n_states                       : b1          -> lanes [0, hidden)
      rows [n_states+1, n_states+1+A)     : W2 row per action -> lanes [0, hidden)
      row  n_states+1+A                   : b2          -> lanes [0, n_actions)
    """
    hidden, n_states = w1_pt.shape
    n_actions = w2_pt.shape[0]
    rows = n_states + 1 + n_actions + 1
    p_rows = ((rows + 7) // 8) * 8
    slab = jnp.zeros((p_rows, lanes), jnp.float32)
    slab = slab.at[:n_states, :hidden].set(w1_pt.T.astype(jnp.float32))
    slab = slab.at[n_states, :hidden].set(b1.astype(jnp.float32))
    slab = slab.at[n_states + 1:n_states + 1 + n_actions, :hidden].set(
        w2_pt.astype(jnp.float32))
    slab = slab.at[n_states + 1 + n_actions, :n_actions].set(b2.astype(jnp.float32))
    return slab


def _make_kernel(n_states, n_actions):
    b1_row = n_states
    w2_row0 = n_states + 1
    b2_row = n_states + 1 + n_actions

    def kernel(x_ref, p_ref, out_ref):
        tb, lanes = out_ref.shape
        x = x_ref[...]                                            # (tb, n_states) f32

        # ---- fc1 + bias: unrolled VPU multiply-accumulate over tiny K (no MXU).
        acc = p_ref[pl.ds(b1_row, 1), :] + x[:, 0:1] * p_ref[pl.ds(0, 1), :]
        for k in range(1, n_states):                              # static unroll
            acc = acc + x[:, k:k + 1] * p_ref[pl.ds(k, 1), :]
        h = jnp.tanh(acc)                                         # (tb, lanes); padding lanes stay 0

        # ---- fc2: one lane reduction per action (hidden on lanes, zero-padded).
        b2v = p_ref[pl.ds(b2_row, 1), :]                          # (1, lanes)
        logits = []
        for a in range(n_actions):                                # static unroll
            w2a = p_ref[pl.ds(w2_row0 + a, 1), :]                 # (1, lanes)
            la = jnp.sum(h * w2a, axis=-1, keepdims=True) + b2v[:, a:a + 1]
            logits.append(la)                                     # (tb, 1)

        # ---- softmax over per-row action columns.
        if n_actions == 2:
            # 2-class closed form: p0 = sigmoid(l0 - l1); no cross-lane max/sum.
            d = logits[0] - logits[1]
            p0 = pl.reciprocal(1.0 + jnp.exp(-d))
            probs = [p0, 1.0 - p0]
        else:
            m = logits[0]
            for la in logits[1:]:
                m = jnp.maximum(m, la)
            exps = [jnp.exp(la - m) for la in logits]
            denom = exps[0]
            for e in exps[1:]:
                denom = denom + e
            inv = pl.reciprocal(denom)
            probs = [e * inv for e in exps]

        # ---- lane-dense padded store (unmasked vst); wrapper slices to N_ACTIONS.
        lane = jax.lax.broadcasted_iota(jnp.int32, (tb, lanes), 1)
        out = jnp.zeros((tb, lanes), jnp.float32)
        for a in range(n_actions):
            out = jnp.where(lane == a, probs[a], out)
        out_ref[...] = out

    return kernel


def net_forward(x, params, *, n_states, n_actions, tile_b=TILE_B, lanes=LANES):
    """Batched Net forward: x (B, n_states) f32, params = pack_params(...)."""
    b = x.shape[0]
    b_pad = ((b + tile_b - 1) // tile_b) * tile_b
    if b_pad != b:
        x = jnp.pad(x, ((0, b_pad - b), (0, 0)))
    p_rows = params.shape[0]
    kernel = _make_kernel(n_states, n_actions)
    out_padded = pl.pallas_call(
        kernel,
        out_shape=jax.ShapeDtypeStruct((b_pad, lanes), jnp.float32),
        grid=(b_pad // tile_b,),
        in_specs=[
            pl.BlockSpec((tile_b, n_states), lambda i: (i, 0)),   # batch tile
            pl.BlockSpec((p_rows, lanes), lambda i: (0, 0)),      # param slab (fetched once)
        ],
        out_specs=pl.BlockSpec((tile_b, lanes), lambda i: (i, 0)),
        compiler_params=pltpu.CompilerParams(
            dimension_semantics=("parallel",)),                   # v7x: shard tiles over 2 TCs
    )(x, params)
    return out_padded[:b, :n_actions]


if __name__ == "__main__":
    # CartPole-like shapes: N_STATES=4, N_ACTIONS=2, hidden=10. Batch 1024
    # observations per call to amortize launch/DMA overhead.
    N_STATES, HIDDEN, N_ACTIONS = 4, 10, 2
    B = 1024

    key = jax.random.PRNGKey(0)
    k_x, k_w1, k_b1, k_w2, k_b2 = jax.random.split(key, 5)

    x = jax.random.normal(k_x, (B, N_STATES), dtype=jnp.float32)
    # PyTorch nn.Linear layout: weight is (out_features, in_features).
    w1 = 0.3 * jax.random.normal(k_w1, (HIDDEN, N_STATES), dtype=jnp.float32)
    b1 = 0.1 * jax.random.normal(k_b1, (HIDDEN,), dtype=jnp.float32)
    w2 = 0.3 * jax.random.normal(k_w2, (N_ACTIONS, HIDDEN), dtype=jnp.float32)
    b2 = 0.1 * jax.random.normal(k_b2, (N_ACTIONS,), dtype=jnp.float32)

    # Pack once per optimizer update; reuse across environment steps.
    params = pack_params(w1, b1, w2, b2)

    act_prob = net_forward(x, params, n_states=N_STATES, n_actions=N_ACTIONS)
    jax.block_until_ready(act_prob)

    # Pure-JAX reference (high-precision dots to match exact f32 VPU accumulation).
    hi = jax.lax.Precision.HIGHEST
    h_ref = jnp.tanh(jnp.dot(x, w1.T, precision=hi) + b1)
    ref = jax.nn.softmax(jnp.dot(h_ref, w2.T, precision=hi) + b2, axis=-1)

    assert act_prob.shape == (B, N_ACTIONS)
    assert jnp.allclose(act_prob, ref, atol=1e-5, rtol=1e-5), "mismatch vs reference"
    assert jnp.allclose(jnp.sum(act_prob, axis=-1), 1.0, atol=1e-5)

    print("KERNEL_OK")
</pallas_src>

<mosaic_0001>
module attributes {stable_mosaic.version = 11 : i64} {
  func.func @kernel(%arg0: i32, %arg1: memref<128x4xf32, #tpu.memory_space<vmem>>, %arg2: memref<8x128xf32, #tpu.memory_space<vmem>>, %arg3: memref<128x128xf32, #tpu.memory_space<vmem>>) attributes {dimension_semantics = [#tpu.dimension_semantics<parallel>], iteration_bounds = array<i64: 8>, scalar_prefetch = 0 : i64, scratch_operands = 0 : i64, tpu.core_type = #tpu.core_type<tc>, window_params = [{transform_indices = @transform_0, window_bounds = array<i64: 128, 4>}, {pipeline_mode = #tpu.pipeline_mode<synchronous>, transform_indices = @transform_1, window_bounds = array<i64: 8, 128>}, {transform_indices = @transform_2, window_bounds = array<i64: 128, 128>}]} {
    %c0 = arith.constant 0 : index
    %c0_0 = arith.constant 0 : index
    %0 = vector.load %arg1[%c0, %c0_0] : memref<128x4xf32, #tpu.memory_space<vmem>>, vector<128x4xf32>
    %c4 = arith.constant 4 : index
    %c0_1 = arith.constant 0 : index
    %1 = vector.load %arg2[%c4, %c0_1] : memref<8x128xf32, #tpu.memory_space<vmem>>, vector<1x128xf32>
    %2 = vector.extract_strided_slice %0 {offsets = [0, 0], sizes = [128, 1], strides = [1, 1]} : vector<128x4xf32> to vector<128x1xf32>
    %c0_2 = arith.constant 0 : index
    %c0_3 = arith.constant 0 : index
    %3 = vector.load %arg2[%c0_2, %c0_3] : memref<8x128xf32, #tpu.memory_space<vmem>>, vector<1x128xf32>
    %4 = vector.broadcast %2 : vector<128x1xf32> to vector<128x128xf32>
    %5 = vector.broadcast %3 : vector<1x128xf32> to vector<128x128xf32>
    %6 = arith.mulf %4, %5 : vector<128x128xf32>
    %7 = vector.broadcast %1 : vector<1x128xf32> to vector<128x128xf32>
    %8 = arith.addf %7, %6 : vector<128x128xf32>
    %9 = vector.extract_strided_slice %0 {offsets = [0, 1], sizes = [128, 1], strides = [1, 1]} : vector<128x4xf32> to vector<128x1xf32>
    %c1 = arith.constant 1 : index
    %c0_4 = arith.constant 0 : index
    %10 = vector.load %arg2[%c1, %c0_4] : memref<8x128xf32, #tpu.memory_space<vmem>>, vector<1x128xf32>
    %11 = vector.broadcast %9 : vector<128x1xf32> to vector<128x128xf32>
    %12 = vector.broadcast %10 : vector<1x128xf32> to vector<128x128xf32>
    %13 = arith.mulf %11, %12 : vector<128x128xf32>
    %14 = arith.addf %8, %13 : vector<128x128xf32>
    %15 = vector.extract_strided_slice %0 {offsets = [0, 2], sizes = [128, 1], strides = [1, 1]} : vector<128x4xf32> to vector<128x1xf32>
    %c2 = arith.constant 2 : index
    %c0_5 = arith.constant 0 : index
    %16 = vector.load %arg2[%c2, %c0_5] : memref<8x128xf32, #tpu.memory_space<vmem>>, vector<1x128xf32>
    %17 = vector.broadcast %15 : vector<128x1xf32> to vector<128x128xf32>
    %18 = vector.broadcast %16 : vector<1x128xf32> to vector<128x128xf32>
    %19 = arith.mulf %17, %18 : vector<128x128xf32>
    %20 = arith.addf %14, %19 : vector<128x128xf32>
    %21 = vector.extract_strided_slice %0 {offsets = [0, 3], sizes = [128, 1], strides = [1, 1]} : vector<128x4xf32> to vector<128x1xf32>
    %c3 = arith.constant 3 : index
    %c0_6 = arith.constant 0 : index
    %22 = vector.load %arg2[%c3, %c0_6] : memref<8x128xf32, #tpu.memory_space<vmem>>, vector<1x128xf32>
    %23 = vector.broadcast %21 : vector<128x1xf32> to vector<128x128xf32>
    %24 = vector.broadcast %22 : vector<1x128xf32> to vector<128x128xf32>
    %25 = arith.mulf %23, %24 : vector<128x128xf32>
    %26 = arith.addf %20, %25 : vector<128x128xf32>
    %27 = math.tanh %26 : vector<128x128xf32>
    %c7 = arith.constant 7 : index
    %c0_7 = arith.constant 0 : index
    %28 = vector.load %arg2[%c7, %c0_7] : memref<8x128xf32, #tpu.memory_space<vmem>>, vector<1x128xf32>
    %c5 = arith.constant 5 : index
    %c0_8 = arith.constant 0 : index
    %29 = vector.load %arg2[%c5, %c0_8] : memref<8x128xf32, #tpu.memory_space<vmem>>, vector<1x128xf32>
    %30 = vector.broadcast %29 : vector<1x128xf32> to vector<128x128xf32>
    %31 = arith.mulf %27, %30 : vector<128x128xf32>
    %cst = arith.constant dense<0.000000e+00> : vector<128xf32>
    %32 = vector.multi_reduction <add>, %31, %cst [1] : vector<128x128xf32> to vector<128xf32>
    %33 = vector.shape_cast %32 : vector<128xf32> to vector<128x1xf32>
    %34 = vector.extract_strided_slice %28 {offsets = [0, 0], sizes = [1, 1], strides = [1, 1]} : vector<1x128xf32> to vector<1x1xf32>
    %35 = vector.broadcast %34 : vector<1x1xf32> to vector<128x1xf32>
    %36 = arith.addf %33, %35 : vector<128x1xf32>
    %c6 = arith.constant 6 : index
    %c0_9 = arith.constant 0 : index
    %37 = vector.load %arg2[%c6, %c0_9] : memref<8x128xf32, #tpu.memory_space<vmem>>, vector<1x128xf32>
    %38 = vector.broadcast %37 : vector<1x128xf32> to vector<128x128xf32>
    %39 = arith.mulf %27, %38 : vector<128x128xf32>
    %cst_10 = arith.constant dense<0.000000e+00> : vector<128xf32>
    %40 = vector.multi_reduction <add>, %39, %cst_10 [1] : vector<128x128xf32> to vector<128xf32>
    %41 = vector.shape_cast %40 : vector<128xf32> to vector<128x1xf32>
    %42 = vector.extract_strided_slice %28 {offsets = [0, 1], sizes = [1, 1], strides = [1, 1]} : vector<1x128xf32> to vector<1x1xf32>
    %43 = vector.broadcast %42 : vector<1x1xf32> to vector<128x1xf32>
    %44 = arith.addf %41, %43 : vector<128x1xf32>
    %45 = arith.subf %36, %44 : vector<128x1xf32>
    %cst_11 = arith.constant 0.000000e+00 : f32
    %46 = vector.broadcast %cst_11 : f32 to vector<128x1xf32>
    %47 = arith.subf %46, %45 : vector<128x1xf32>
    %48 = math.exp %47 : vector<128x1xf32>
    %cst_12 = arith.constant 1.000000e+00 : f32
    %49 = vector.broadcast %cst_12 : f32 to vector<128x1xf32>
    %50 = arith.addf %49, %48 : vector<128x1xf32>
    %51 = tpu.reciprocal %50 : vector<128x1xf32> -> vector<128x1xf32>
    %cst_13 = arith.constant 1.000000e+00 : f32
    %52 = vector.broadcast %cst_13 : f32 to vector<128x1xf32>
    %53 = arith.subf %52, %51 : vector<128x1xf32>
    %54 = tpu.iota {dimensions = array<i32: 1>} : vector<128x128xi32>
    %cst_14 = arith.constant 0.000000e+00 : f32
    %55 = vector.broadcast %cst_14 : f32 to vector<128x128xf32>
    %c0_i32 = arith.constant 0 : i32
    %56 = vector.broadcast %c0_i32 : i32 to vector<128x128xi32>
    %57 = arith.cmpi eq, %54, %56 : vector<128x128xi32>
    %58 = vector.shape_cast %51 : vector<128x1xf32> to vector<128x1xf32>
    %59 = vector.broadcast %58 : vector<128x1xf32> to vector<128x128xf32>
    %60 = arith.select %57, %59, %55 : vector<128x128xi1>, vector<128x128xf32>
    %c1_i32 = arith.constant 1 : i32
    %61 = vector.broadcast %c1_i32 : i32 to vector<128x128xi32>
    %62 = arith.cmpi eq, %54, %61 : vector<128x128xi32>
    %63 = vector.shape_cast %53 : vector<128x1xf32> to vector<128x1xf32>
    %64 = vector.broadcast %63 : vector<128x1xf32> to vector<128x128xf32>
    %65 = arith.select %62, %64, %60 : vector<128x128xi1>, vector<128x128xf32>
    %c0_15 = arith.constant 0 : index
    %c0_16 = arith.constant 0 : index
    %66 = vector.load %arg3[%c0_15, %c0_16] : memref<128x128xf32, #tpu.memory_space<vmem>>, vector<128x128xf32>
    tpu.vector_store %arg3[%c0_15, %c0_16], %65 {strides = array<i32>} : memref<128x128xf32, #tpu.memory_space<vmem>>, vector<128x128xf32>,
    return
  }
  func.func @transform_0(%arg0: i32) -> (i32, i32) {
    %c0_i32 = arith.constant 0 : i32
    %c0_i32_0 = arith.constant 0 : i32
    return %arg0, %c0_i32 : i32, i32
  }
  func.func @transform_1(%arg0: i32) -> (i32, i32) {
    %c0_i32 = arith.constant 0 : i32
    %c0_i32_0 = arith.constant 0 : i32
    %c0_i32_1 = arith.constant 0 : i32
    return %c0_i32, %c0_i32_0 : i32, i32
  }
  func.func @transform_2(%arg0: i32) -> (i32, i32) {
    %c0_i32 = arith.constant 0 : i32
    %c0_i32_0 = arith.constant 0 : i32
    return %arg0, %c0_i32 : i32, i32
  }
}

</mosaic_0001>

<bundles_post_ra>
// kernel: tpu_custom_call.1
= control target key start
LH: loop header
LB: loop body
LE: loop exit
PB: predicated region body
PF: predicated region fallthrough
CT: control target
= control target key end

     0   :  { %7 = vsyncpa [#allocation3], 0  ;;  %s2639_s0 = inlined_call_operand.vmem [shape: f32[1024,4], index: 0, kind: input, shape index: {}]   ;;  %s2640_s1 = inlined_call_operand.vmem [shape: f32[8,128], index: 1, kind: input, shape index: {}]   ;;  %s2641_s2 = inlined_call_operand.hbm [shape: f32[1024,128], index: 2, kind: output, shape index: {}]  }
   0x1   :  { %9 = vsyncpa [#allocation3 + $0x1], 0  ;;  %s1658_s9 = smov 0   ;;  %s1660_s10 = smov 0  }
   0x2   :  { %s1662_s11 = smov 0   ;;  %s1664_s12 = smov 0  }
   0x3 LB: > { %s1679_s13 = sadd.s32 4294967295, %s1634_s12   ;;  %s1395_s14 = sadd.s32 4294967294, %s1634_s12   ;;  %s1634_s12 = sphi %s1664_s12, %s2673_s12   ;;  %s1630_s11 = sphi %s1662_s11, %s2672_s11   ;;  %s1626_s10 = sphi %s1660_s10, %s2671_s10   ;;  %s1622_s9 = sphi %s1658_s9, %s2670_s9  }
   0x4   : > { %s1683_s15 = sadd.s32 1, %s1634_s12   ;;  %s69_s16 = sadd.s32 1, %s1630_s11 }
   0x5   : > { %s66_s17 = ssub.s32 %s1634_s12, %s1683_s15  ;;  %p79_p0 = scmp.ne.s32.totalorder %s1630_s11, %s1626_s10 }
   0x6   : > { %p67_p1 = scmp.eq.s32.totalorder %s66_s17, 0  ;;  %p80_p2 = scmp.eq.s32.totalorder %s1679_s13, 7 }
   0x7   : > { %p85_p3 = scmp.ne.s32.totalorder %s1626_s10, %s1622_s9  ;;  %p86_p4 = scmp.eq.s32.totalorder %s1395_s14, 7 }
   0x8   : > { %s1694_s18 = scalar_select %p67_p1, %s1630_s11, %s69_s16  }
   0x9   : > { %p1696_p5 = por %p80_p2, %p79_p0  ;;  %p1700_p6 = por %p86_p4, %p85_p3 }
   0xa   : > { %p1398_p7 = scmp.ge.s32.totalorder %s1634_s12, 1  ;;  %p116_p8 = scmp.lt.s32.totalorder %s1634_s12, 9 }
   0xc   : > { %p117_p9 = pnand %p1398_p7, %p116_p8 }
   0xd   : > { %s1400_s21 = sshll.u32 (!%p117_p9), %s1679_s13, 4  ;;  %s1640_s23 = smov (!%p117_p9), 127  }
   0xe   : > { %120 = sbr.rel (%p117_p9) target bundleno = 797 (0x31d), region = 28  ;;  %p139_p10 = scmp.lt.s32.totalorder (!%p117_p9), %s1400_s21, 127 }
   0xf   : > { %s135_s24 = sand.u32 (!%p117_p9), 1, %s1626_s10   ;;  %s1407_s27 = sshll.u32 (!%p117_p9), %s1679_s13, 7 }
  0x10   : > { %s1329_s30 = scalar_lea.hbm (!%p117_p9), %s2641_s2, %s1407_s27  ;;  %s1318_s4 = scalar_lea.sflag (!%p117_p9), [#allocation3], %s135_s24 }
  0x11   : > { %s1332_s3 = sshll.u32 (!%p117_p9), %s1329_s30, 4  ;;  %s1592_s14 = scalar_lea.hbm (!%p117_p9), %s2641_s2, 1024  ;;  %s1333_s3 = int_to_ptr.hbm [resolvable:$true] %s1332_s3 }
  0x12   : > { %s1586_s5 = sshra.s32 (!%p117_p9), %s1333_s3, 4  ;;  %s1587_s5 = int_to_ptr.hbm [resolvable:$true] %s1586_s5 }
  0x13   : > { %v1636_v0 = vmov 1   ;;  %v1637_v1 = vmov 0   ;;  %s2675_s21 = smov (!%p139_p10, %s1400_s21), 127  ;;  %v1638_v13 = vmov 2   ;;  %v1639_v18 = vmov 3   ;;  %s1588_s6 = scalar_lea.hbm %s1587_s5, 128 }
  0x14   : > { %1458 = vset.pattern.permute.xlu0 %v1636_v0  ;;  %1455 = vset.pattern.permute.xlu2 %v1637_v1  ;;  %s1401_s22 = sshll.u32 %s2675_s21, 3  ;;  %v1801_v23 = vld [vmem:[%s2640_s1] ss:$0 sm:$0xff]  ;;  %v1806_v24 = vld [vmem:[%s2640_s1 + $0x1] ss:$0 sm:$0xff]  ;;  %p1589_p11 = scmp.ne.s32.totalorder %s1587_s5, %s1588_s6 }
  0x15   : > { %1454 = vset.pattern.permute.xlu1 %v1637_v1  ;;  %s1712_s25 = scalar_lea.vmem %s2639_s0, %s1401_s22  ;;  %v1811_v25 = vld [vmem:[%s2640_s1 + $0x4] ss:$0 sm:$0xff]  ;;  %p1593_p0 = scmp.lt.s32.totalorder %s1587_s5, %s2641_s2 }
  0x16   : > { %v1715_v2 = vld [vmem:[%s1712_s25 + $0x20] sm:$0xff]  ;;  %v1718_v3 = vld [vmem:[%s1712_s25 + $0x10] sm:$0xff]  ;;  %v1724_v4 = vld [vmem:[%s1712_s25 + $0x28] sm:$0xff]  ;;  %p1590_p12 = pnand %p1589_p11, %p1696_p5  ;;  %p1594_p1 = scmp.lt.s32.totalorder %s1592_s14, %s1588_s6 }
  0x17   : > { %185 = vperm.xlu2 %1455, %v1715_v2   ;;  %287 = vperm.xlu0 %1458, %v1718_v3   ;;  %v1727_v5 = vld [vmem:[%s1712_s25 + $0x38] sm:$0xff]  ;;  %v1736_v7 = vld [vmem:[%s1712_s25 + $0x40] sm:$0xff]  ;;  %v1739_v8 = vld [vmem:[%s1712_s25 + $0x50] sm:$0xff] }
  0x18   : > { %175 = vperm.xlu1 %1454, %v1718_v3   ;;  %v1730_v6 = vld [vmem:[%s1712_s25 + $0x18] sm:$0xff]  ;;  %v1748_v10 = vld [vmem:[%s1712_s25 + $0x68] sm:$0xff]  ;;  %v1754_v11 = vld [vmem:[%s1712_s25 + $0x70] sm:$0xff]  ;;  %p1591_p13 = pneg %p1590_p12  ;;  %p1595_p2 = por %p1594_p1, %p1593_p0 }
  0x19   : > { %v1745_v9 = vld [vmem:[%s1712_s25 + $0x58] sm:$0xff]  ;;  %v1757_v12 = vld [vmem:[%s1712_s25] sm:$0xff]  ;;  %v146_v14 = vld [vmem:[%s1712_s25 + $0x8] sm:$0xff] }
  0x1a   : > { %v151_v15 = vld [vmem:[%s1712_s25 + $0x30] sm:$0xff]  ;;  %v1772_v16 = vld [vmem:[%s1712_s25 + $0x48] sm:$0xff]  ;;  %v1778_v17 = vld [vmem:[%s1712_s25 + $0x60] sm:$0xff]  ;;  %p1596_p3 = pnand %p1595_p2, %p1591_p13 }
  0x1b   : > { %v1783_v19 = vld [vmem:[%s1712_s25 + $0x78] sm:$0xff]  ;;  %s1399_s25 = sshll.u32 %s135_s24, 7 }
  0x1c   : > { %s2525_s26 = scalar_lea.vmem [#allocation2], %s1399_s25 }
  0x1d   : > { %s1330_s13 = sshll.u32 %s2525_s26, 4  ;;  %s1331_s13 = int_to_ptr.vmem [resolvable:$true] %s1330_s13 }
  0x1f   : > { %190 = vperm.xlu2 %1455, %v1724_v4   ;;  %307 = vperm.xlu0 %1458, %v1727_v5  }
  0x20   : > { %180 = vperm.xlu1 %1454, %v1730_v6  }
  0x27   : > { %205 = vperm.xlu2 %1455, %v1736_v7   ;;  %319 = vperm.xlu0 %1458, %v1739_v8  }
  0x28   : > { %200 = vperm.xlu1 %1454, %v1727_v5  }
  0x2f   : > { %220 = vperm.xlu2 %1455, %v1745_v9   ;;  %331 = vperm.xlu0 %1458, %v1748_v10  }
  0x30   : > { %215 = vperm.xlu1 %1454, %v1739_v8  }
  0x37   : > { %235 = vperm.xlu2 %1455, %v1754_v11   ;;  %1459 = vset.pattern.permute.xlu0 %v1638_v13 }
  0x38   : > { %230 = vperm.xlu1 %1454, %v1748_v10   ;;  %377 = vperm.xlu0 %1459, %v1757_v12  }
  0x3f   : > { %1457 = vset.pattern.permute.xlu2 %v1636_v0 }
  0x40   : > { %1456 = vset.pattern.permute.xlu1 %v1636_v0  ;;  %283 = vperm.xlu2 %1457, %v146_v14  }
  0x41   : > { %397 = vperm.xlu0 %1459, %v1724_v4   ;;  %279 = vperm.xlu1 %1456, %v1757_v12  }
  0x48   : > { %295 = vperm.xlu2 %1457, %v1715_v2  }
  0x49   : > { %409 = vperm.xlu0 %1459, %v1736_v7   ;;  %291 = vperm.xlu1 %1456, %v1730_v6  }
  0x50   : > { %303 = vperm.xlu2 %1457, %v151_v15  }
  0x51   : > { %421 = vperm.xlu0 %1459, %v1745_v9   ;;  %299 = vperm.xlu1 %1456, %v1724_v4  }
  0x58   : > { %315 = vperm.xlu2 %1457, %v1772_v16  }
  0x59   : > { %433 = vperm.xlu0 %1459, %v1754_v11   ;;  %311 = vperm.xlu1 %1456, %v1736_v7  }
  0x60   : > { %327 = vperm.xlu2 %1457, %v1778_v17  }
  0x61   : > { %1463 = vset.pattern.permute.xlu0 %v1639_v18  ;;  %323 = vperm.xlu1 %1456, %v1745_v9  }
  0x62   : > { %479 = vperm.xlu0 %1463, %v146_v14  }
  0x68   : > { %339 = vperm.xlu2 %1457, %v1783_v19  }
  0x69   : > { %335 = vperm.xlu1 %1456, %v1754_v11  }
  0x6a   : > { %499 = vperm.xlu0 %1463, %v151_v15  }
  0x70   : > { %1461 = vset.pattern.permute.xlu2 %v1638_v13 }
  0x71   : > { %1460 = vset.pattern.permute.xlu1 %v1638_v13  ;;  %v186_v20 = vpop.permute.xlu2 %185  ;;  %385 = vperm.xlu2 %1461, %v1718_v3  }
  0x72   : > { %511 = vperm.xlu0 %1463, %v1772_v16   ;;  %381 = vperm.xlu1 %1460, %v146_v14   ;;  %v248_v42 = vmul.f32 %v1801_v23, %v186_v20 }
  0x74   : > { %v265_v47 = vadd.f32 %v1811_v25, %v248_v42 }
  0x79   : > { %v1789_v21 = vpop.permute.xlu2 %190  ;;  %393 = vperm.xlu2 %1461, %v1715_v2  }
  0x7a   : > { %523 = vperm.xlu0 %1463, %v1778_v17   ;;  %389 = vperm.xlu1 %1460, %v1730_v6  }
  0x81   : > { %v1794_v22 = vpop.permute.xlu2 %205  ;;  %405 = vperm.xlu2 %1461, %v1727_v5  }
  0x82   : > { %535 = vperm.xlu0 %1463, %v1783_v19   ;;  %401 = vperm.xlu1 %1460, %v151_v15  }
  0x89   : > { %v1813_v26 = vpop.permute.xlu2 %220  ;;  %v288_v27 = vpop.permute.xlu0 %287  ;;  %417 = vperm.xlu2 %1461, %v1739_v8  }
  0x8a   : > { %v176_v28 = vpop.permute.xlu1 %175  ;;  %1465 = vset.pattern.permute.xlu0 %v1637_v1  ;;  %413 = vperm.xlu1 %1460, %v1772_v16   ;;  %v345_v29 = vmul.f32 %v1806_v24, %v288_v27 }
  0x8b   : > { %v246_v30 = vmul.f32 %v1801_v23, %v176_v28  ;;  %165 = vperm.xlu0 %1465, %v1757_v12  }
  0x8d   : > { %v263_v31 = vadd.f32 %v1811_v25, %v246_v30 }
  0x8f   : > { %v1822_v32 = vadd.f32 %v345_v29, %v263_v31 }
  0x91   : > { %v1824_v33 = vpop.permute.xlu2 %235  ;;  %v308_v34 = vpop.permute.xlu0 %307  ;;  %429 = vperm.xlu2 %1461, %v1748_v10  }
  0x92   : > { %v181_v35 = vpop.permute.xlu1 %180  ;;  %425 = vperm.xlu1 %1460, %v1778_v17   ;;  %v350_v40 = vmul.f32 %v1806_v24, %v308_v34 }
  0x93   : > { %170 = vperm.xlu0 %1465, %v146_v14   ;;  %v247_v0 = vmul.f32 %v1801_v23, %v181_v35 }
  0x99   : > { %v320_v36 = vpop.permute.xlu0 %319  ;;  %1462 = vset.pattern.permute.xlu2 %v1639_v18 }
  0x9a   : > { %v201_v37 = vpop.permute.xlu1 %200  ;;  %437 = vperm.xlu1 %1460, %v1783_v19   ;;  %v1829_v38 = vpop.permute.xlu2 %283  ;;  %475 = vperm.xlu2 %1462, %v1757_v12   ;;  %v353_v50 = vmul.f32 %v1806_v24, %v320_v36 }
  0x9b   : > { %v251_v39 = vmul.f32 %v1801_v23, %v201_v37  ;;  %195 = vperm.xlu0 %1465, %v151_v15   ;;  %v1888_v15 = vld [vmem:[%s2640_s1 + $0x2] ss:$0 sm:$0xff] }
  0x9d   : > { %v268_v41 = vadd.f32 %v1811_v25, %v251_v39 }
  0x9f   : > { %v1836_v43 = vadd.f32 %v350_v40, %v268_v41  ;;  %v258_v41 = vmul.f32 %v1801_v23, %v1824_v33 }
  0xa1   : > { %v332_v44 = vpop.permute.xlu0 %331 }
  0xa2   : > { %v216_v45 = vpop.permute.xlu1 %215  ;;  %1464 = vset.pattern.permute.xlu1 %v1639_v18  ;;  %v296_v46 = vpop.permute.xlu2 %295  ;;  %487 = vperm.xlu2 %1462, %v1730_v6   ;;  %v356_v58 = vmul.f32 %v1806_v24, %v332_v44  ;;  %v264_v6 = vadd.f32 %v1811_v25, %v247_v0 }
  0xa3   : > { %v254_v48 = vmul.f32 %v1801_v23, %v216_v45  ;;  %v347_v49 = vmul.f32 %v1806_v24, %v296_v46  ;;  %210 = vperm.xlu0 %1465, %v1772_v16   ;;  %483 = vperm.xlu1 %1464, %v1718_v3  }
  0xa5   : > { %v271_v51 = vadd.f32 %v1811_v25, %v254_v48  ;;  %v1846_v52 = vadd.f32 %v347_v49, %v265_v47 }
  0xa7   : > { %v1848_v53 = vadd.f32 %v353_v50, %v271_v51 }
  0xaa   : > { %v231_v54 = vpop.permute.xlu1 %230  ;;  %v1850_v55 = vpop.permute.xlu2 %303  ;;  %495 = vperm.xlu2 %1462, %v1724_v4  }
  0xab   : > { %v257_v56 = vmul.f32 %v1801_v23, %v231_v54  ;;  %225 = vperm.xlu0 %1465, %v1778_v17   ;;  %v1855_v57 = vpop.permute.xlu0 %377  ;;  %491 = vperm.xlu1 %1464, %v1715_v2  }
  0xad   : > { %v274_v59 = vadd.f32 %v1811_v25, %v257_v56 }
  0xaf   : > { %v1860_v60 = vadd.f32 %v356_v58, %v274_v59 }
  0xb2   : > { %v1862_v61 = vpop.permute.xlu2 %315  ;;  %507 = vperm.xlu2 %1462, %v1736_v7  }
  0xb3   : > { %240 = vperm.xlu0 %1465, %v1783_v19   ;;  %v398_v62 = vpop.permute.xlu0 %397  ;;  %503 = vperm.xlu1 %1464, %v1727_v5   ;;  %v1867_v63 = vpop.permute.xlu1 %279  ;;  %v249_v5 = vmul.f32 %v1801_v23, %v1789_v21  ;;  %v252_v19 = vmul.f32 %v1801_v23, %v1794_v22  ;;  %v255_v22 = vmul.f32 %v1801_v23, %v1813_v26 }
  0xb4   : > { %v446_v17 = vmul.f32 %v1888_v15, %v398_v62  ;;  %v275_v26 = vadd.f32 %v1811_v25, %v258_v41 }
  0xb5   : > { %v269_v21 = vadd.f32 %v1811_v25, %v252_v19  ;;  %v272_v35 = vadd.f32 %v1811_v25, %v255_v22 }
  0xba   : > { %v1870_v2 = vpop.permute.xlu2 %327  ;;  %519 = vperm.xlu2 %1462, %v1745_v9  }
  0xbb   : > { %v410_v3 = vpop.permute.xlu0 %409  ;;  %515 = vperm.xlu1 %1464, %v1739_v8   ;;  %v292_v4 = vpop.permute.xlu1 %291  ;;  %v266_v8 = vadd.f32 %v1811_v25, %v249_v5  ;;  %v343_v5 = vmul.f32 %v1806_v24, %v1867_v63 }
  0xbc   : > { %v346_v7 = vmul.f32 %v1806_v24, %v292_v4  ;;  %v449_v29 = vmul.f32 %v1888_v15, %v410_v3 }
  0xbe   : > { %v1876_v12 = vadd.f32 %v346_v7, %v264_v6 }
  0xc2   : > { %v1880_v13 = vpop.permute.xlu2 %339  ;;  %531 = vperm.xlu2 %1462, %v1754_v11  }
  0xc3   : > { %v422_v14 = vpop.permute.xlu0 %421  ;;  %527 = vperm.xlu1 %1464, %v1748_v10   ;;  %v300_v9 = vpop.permute.xlu1 %299 }
  0xc4   : > { %v348_v16 = vmul.f32 %v1806_v24, %v300_v9  ;;  %v452_v39 = vmul.f32 %v1888_v15, %v422_v14  ;;  %v1939_v14 = vld [vmem:[%s2640_s1 + $0x3] ss:$0 sm:$0xff] }
  0xc6   : > { %v364_v18 = vadd.f32 %v348_v16, %v266_v8  ;;  %v441_v8 = vmul.f32 %v1888_v15, %v1855_v57 }
  0xc8   : > { %v1894_v11 = vadd.f32 %v446_v17, %v364_v18 }
  0xca   : > { %1466 = vset.pattern.permute.xlu2 %v1637_v1 }
  0xcb   : > { %v434_v10 = vpop.permute.xlu0 %433  ;;  %v312_v20 = vpop.permute.xlu1 %311  ;;  %1467 = vset.pattern.permute.xlu1 %v1637_v1 }
  0xcc   : > { %v351_v27 = vmul.f32 %v1806_v24, %v312_v20  ;;  %v1900_v28 = vpop.permute.xlu2 %385  ;;  %v455_v48 = vmul.f32 %v1888_v15, %v434_v10 }
  0xce   : > { %v367_v30 = vadd.f32 %v351_v27, %v269_v21  ;;  %v344_v27 = vmul.f32 %v1806_v24, %v1829_v38  ;;  %v1960_v38 = vld [vmem:[%s2640_s1 + $0x5] ss:$0 sm:$0xff] }
  0xd0   : > { %v1905_v31 = vadd.f32 %v449_v29, %v367_v30 }
  0xd3   : > { %v324_v34 = vpop.permute.xlu1 %323 }
  0xd4   : > { %v354_v36 = vmul.f32 %v1806_v24, %v324_v34  ;;  %v1909_v1 = vpop.permute.xlu2 %393  ;;  %v480_v37 = vpop.permute.xlu0 %479 }
  0xd5   : > { %v540_v34 = vmul.f32 %v1939_v14, %v480_v37 }
  0xd6   : > { %v370_v40 = vadd.f32 %v354_v36, %v272_v35 }
  0xd8   : > { %v1914_v42 = vadd.f32 %v452_v39, %v370_v40 }
  0xdb   : > { %v336_v44 = vpop.permute.xlu1 %335 }
  0xdc   : > { %v357_v45 = vmul.f32 %v1806_v24, %v336_v44  ;;  %v1918_v46 = vpop.permute.xlu2 %405  ;;  %v500_v47 = vpop.permute.xlu0 %499 }
  0xde   : > { %v373_v49 = vadd.f32 %v357_v45, %v275_v26 }
  0xe0   : > { %v1921_v50 = vadd.f32 %v455_v48, %v373_v49  ;;  %v349_v49 = vmul.f32 %v1806_v24, %v1850_v55 }
  0xe4   : > { %v1923_v51 = vpop.permute.xlu2 %417  ;;  %v1925_v54 = vpop.permute.xlu0 %511 }
  0xe5   : > { %v382_v33 = vpop.permute.xlu1 %381 }
  0xe6   : > { %v442_v30 = vmul.f32 %v1888_v15, %v382_v33 }
  0xec   : > { %v1927_v56 = vpop.permute.xlu0 %523  ;;  %v1929_v59 = vpop.permute.xlu2 %429 }
  0xed   : > { %v390_v58 = vpop.permute.xlu1 %389 }
  0xee   : > { %v444_v22 = vmul.f32 %v1888_v15, %v390_v58  ;;  %v443_v58 = vmul.f32 %v1888_v15, %v1900_v28 }
  0xf0   : > { %v460_v48 = vadd.f32 %v444_v22, %v1876_v12  ;;  %v548_v22 = vmul.f32 %v1939_v14, %v1925_v54  ;;  %v355_v54 = vmul.f32 %v1806_v24, %v1870_v2 }
  0xf4   : > { %v1931_v62 = vpop.permute.xlu0 %535  ;;  %v476_v3 = vpop.permute.xlu2 %475 }
  0xf5   : > { %v402_v0 = vpop.permute.xlu1 %401  ;;  %v539_v16 = vmul.f32 %v1939_v14, %v476_v3 }
  0xfc   : > { %v488_v17 = vpop.permute.xlu2 %487 }
  0xfd   : > { %v414_v4 = vpop.permute.xlu1 %413  ;;  %v166_v6 = vpop.permute.xlu0 %165  ;;  %v542_v39 = vmul.f32 %v1939_v14, %v488_v17 }
  0xfe   : > { %v244_v7 = vmul.f32 %v1801_v23, %v166_v6  ;;  %v447_v6 = vmul.f32 %v1888_v15, %v402_v0 }
  0xff   : > { %v558_v3 = vadd.f32 %v542_v39, %v460_v48  ;;  %v448_v48 = vmul.f32 %v1888_v15, %v1918_v46 }
 0x100   : > { %v261_v9 = vadd.f32 %v1811_v25, %v244_v7 }
 0x101   : > { %v464_v46 = vadd.f32 %v448_v48, %v1836_v43  ;;  %v358_v43 = vmul.f32 %v1806_v24, %v1880_v13 }
 0x102   : > { %v359_v18 = vadd.f32 %v343_v5, %v261_v9  ;;  %v545_v5 = vmul.f32 %v1939_v14, %v500_v47  ;;  %v459_v9 = vadd.f32 %v443_v58, %v1822_v32  ;;  %v352_v47 = vmul.f32 %v1806_v24, %v1862_v61 }
 0x104   : > { %v457_v19 = vadd.f32 %v441_v8, %v359_v18  ;;  %v496_v35 = vpop.permute.xlu2 %495 }
 0x105   : > { %v1945_v10 = vpop.permute.xlu1 %425  ;;  %v171_v20 = vpop.permute.xlu0 %170  ;;  %v544_v17 = vmul.f32 %v1939_v14, %v496_v35 }
 0x106   : > { %v555_v21 = vadd.f32 %v539_v16, %v457_v19  ;;  %v245_v63 = vmul.f32 %v1801_v23, %v171_v20  ;;  %v453_v58 = vmul.f32 %v1888_v15, %v1945_v10 }
 0x108   : > { %v262_v29 = vadd.f32 %v1811_v25, %v245_v63  ;;  %1476 = vtanh.f32 %v555_v21  ;;  %v445_v63 = vmul.f32 %v1888_v15, %v1909_v1 }
 0x10a   : > { %v360_v57 = vadd.f32 %v344_v27, %v262_v29  ;;  %v450_v27 = vmul.f32 %v1888_v15, %v414_v4  ;;  %v560_v29 = vadd.f32 %v544_v17, %v1894_v11  ;;  %v461_v61 = vadd.f32 %v445_v63, %v1846_v52 }
 0x10c   : > { %v458_v36 = vadd.f32 %v442_v30, %v360_v57  ;;  %v508_v20 = vpop.permute.xlu2 %507 }
 0x10d   : > { %v1955_v40 = vpop.permute.xlu1 %437  ;;  %v196_v41 = vpop.permute.xlu0 %195  ;;  %v547_v35 = vmul.f32 %v1939_v14, %v508_v20 }
 0x10e   : > { %v1962_v44 = vpop.eup %1476  ;;  %v556_v26 = vadd.f32 %v540_v34, %v458_v36  ;;  %v250_v45 = vmul.f32 %v1801_v23, %v196_v41 }
 0x10f   : > { %v590_v37 = vmul.f32 %v1962_v44, %v1960_v38 }
 0x110   : > { %v267_v33 = vadd.f32 %v1811_v25, %v250_v45  ;;  %1478 = vtanh.f32 %v556_v26 }
 0x111   : > { %606 = vadd.xlane.f32.xlu1 %v590_v37  ;;  %1480 = vtanh.f32 %v558_v3  ;;  %v563_v37 = vadd.f32 %v547_v35, %v1905_v31 }
 0x112   : > { %v365_v7 = vadd.f32 %v349_v49, %v267_v33 }
 0x114   : > { %v463_v12 = vadd.f32 %v447_v6, %v365_v7  ;;  %v520_v49 = vpop.permute.xlu2 %519  ;;  %v551_v6 = vmul.f32 %v1939_v14, %v1927_v56 }
 0x115   : > { %v211_v8 = vpop.permute.xlu0 %210  ;;  %v484_v16 = vpop.permute.xlu1 %483 }
 0x116   : > { %v1976_v55 = vpop.eup %1478  ;;  %v561_v18 = vadd.f32 %v545_v5, %v463_v12  ;;  %v253_v28 = vmul.f32 %v1801_v23, %v211_v8  ;;  %v541_v19 = vmul.f32 %v1939_v14, %v484_v16 }
 0x117   : > { %v591_v0 = vmul.f32 %v1976_v55, %v1960_v38  ;;  %v1990_v57 = vpop.eup %1480 }
 0x118   : > { %v270_v32 = vadd.f32 %v1811_v25, %v253_v28  ;;  %v557_v21 = vadd.f32 %v541_v19, %v459_v9  ;;  %v593_v41 = vmul.f32 %v1990_v57, %v1960_v38  ;;  %v550_v9 = vmul.f32 %v1939_v14, %v520_v49  ;;  %v1474_v49 = vld [vmem:[%s2640_s1 + $0x6] ss:$0 sm:$0xff] }
 0x119   : > { %608 = vadd.xlane.f32.xlu2 %v591_v0  ;;  %v451_v19 = vmul.f32 %v1888_v15, %v1923_v51  ;;  %v456_v0 = vmul.f32 %v1888_v15, %v1955_v40  ;;  %v554_v51 = vmul.f32 %v1939_v14, %v1931_v62 }
 0x11a   : > { %v368_v30 = vadd.f32 %v352_v47, %v270_v32  ;;  %1482 = vtanh.f32 %v557_v21  ;;  %v566_v47 = vadd.f32 %v550_v9, %v1914_v42 }
 0x11b   : > { %1484 = vtanh.f32 %v560_v29  ;;  %v467_v21 = vadd.f32 %v451_v19, %v1848_v53 }
 0x11c   : > { %v466_v34 = vadd.f32 %v450_v27, %v368_v30  ;;  %1486 = vtanh.f32 %v561_v18  ;;  %v532_v13 = vpop.permute.xlu2 %531 }
 0x11d   : > { %v226_v36 = vpop.permute.xlu0 %225  ;;  %v492_v39 = vpop.permute.xlu1 %491  ;;  %v553_v40 = vmul.f32 %v1939_v14, %v532_v13 }
 0x11e   : > { %v564_v1 = vadd.f32 %v548_v22, %v466_v34  ;;  %v256_v4 = vmul.f32 %v1801_v23, %v226_v36  ;;  %v543_v11 = vmul.f32 %v1939_v14, %v492_v39 }
 0x11f   : > { %v569_v35 = vadd.f32 %v553_v40, %v1921_v50 }
 0x120   : > { %v2000_v26 = vpop.eup %1482  ;;  %v273_v52 = vadd.f32 %v1811_v25, %v256_v4  ;;  %v559_v45 = vadd.f32 %v543_v11, %v461_v61  ;;  %v454_v61 = vmul.f32 %v1888_v15, %v1929_v59 }
 0x121   : > { %612 = vadd.xlane.f32.xlu2 %v593_v41  ;;  %v592_v33 = vmul.f32 %v2000_v26, %v1960_v38  ;;  %v2012_v2 = vpop.eup %1484 }
 0x122   : > { %v371_v3 = vadd.f32 %v355_v54, %v273_v52  ;;  %1488 = vtanh.f32 %v559_v45  ;;  %v2017_v12 = vpop.eup %1486  ;;  %v595_v17 = vmul.f32 %v2012_v2, %v1960_v38  ;;  %v470_v4 = vadd.f32 %v454_v61, %v1860_v60 }
 0x123   : > { %610 = vadd.xlane.f32.xlu0 %v592_v33  ;;  %1490 = vtanh.f32 %v563_v37  ;;  %v658_v33 = vmul.f32 %v1976_v55, %v1474_v49 }
 0x124   : > { %v469_v7 = vadd.f32 %v453_v58, %v371_v3  ;;  %1492 = vtanh.f32 %v564_v1  ;;  %v659_v58 = vmul.f32 %v2000_v26, %v1474_v49  ;;  %v657_v3 = vmul.f32 %v1962_v44, %v1474_v49 }
 0x125   : > { %v241_v31 = vpop.permute.xlu0 %240  ;;  %v504_v5 = vpop.permute.xlu1 %503 }
 0x126   : > { %v567_v8 = vadd.f32 %v551_v6, %v469_v7  ;;  %v259_v10 = vmul.f32 %v1801_v23, %v241_v31  ;;  %v546_v16 = vmul.f32 %v1939_v14, %v504_v5  ;;  %v596_v23 = vmul.f32 %v2017_v12, %v1960_v38 }
 0x127   : > { %v660_v7 = vmul.f32 %v1990_v57, %v1474_v49  ;;  %v663_v31 = vmul.f32 %v2017_v12, %v1474_v49 }
 0x128   : > { %v2024_v18 = vpop.eup %1488  ;;  %v276_v56 = vadd.f32 %v1811_v25, %v259_v10  ;;  %v562_v28 = vadd.f32 %v546_v16, %v464_v46 }
 0x129   : > { %616 = vadd.xlane.f32.xlu2 %v595_v17  ;;  %v594_v20 = vmul.f32 %v2024_v18, %v1960_v38  ;;  %v2038_v25 = vpop.eup %1490  ;;  %v661_v6 = vmul.f32 %v2024_v18, %v1474_v49 }
 0x12a   : > { %v374_v24 = vadd.f32 %v358_v43, %v276_v56  ;;  %1494 = vtanh.f32 %v562_v28  ;;  %v2043_v27 = vpop.eup %1492  ;;  %v598_v30 = vmul.f32 %v2038_v25, %v1960_v38  ;;  %v665_v55 = vmul.f32 %v2038_v25, %v1474_v49 }
 0x12b   : > { %618 = vadd.xlane.f32.xlu0 %v596_v23  ;;  %614 = vadd.xlane.f32.xlu1 %v594_v20  ;;  %1496 = vtanh.f32 %v566_v47  ;;  %v599_v62 = vmul.f32 %v2043_v27, %v1960_v38  ;;  %v666_v5 = vmul.f32 %v2043_v27, %v1474_v49 }
 0x12c   : > { %v472_v32 = vadd.f32 %v456_v0, %v374_v24  ;;  %1498 = vtanh.f32 %v567_v8 }
 0x12d   : > { %v516_v63 = vpop.permute.xlu1 %515 }
 0x12e   : > { %v570_v42 = vadd.f32 %v554_v51, %v472_v32  ;;  %v549_v29 = vmul.f32 %v1939_v14, %v516_v63  ;;  %v2110_v51 = vld [vmem:[%s2640_s1 + $0x7] ss:$0 sm:$0xff] }
 0x130   : > { %v1495_v22 = vpop.eup %1494  ;;  %v565_v34 = vadd.f32 %v549_v29, %v467_v21 }
 0x131   : > { %622 = vadd.xlane.f32.xlu2 %v598_v30  ;;  %v597_v53 = vmul.f32 %v1495_v22, %v1960_v38  ;;  %v1497_v36 = vpop.eup %1496  ;;  %v664_v46 = vmul.f32 %v1495_v22, %v1474_v49 }
 0x132   : > { %1500 = vtanh.f32 %v565_v34  ;;  %v1499_v1 = vpop.eup %1498  ;;  %v601_v41 = vmul.f32 %v1497_v36, %v1960_v38  ;;  %v668_v26 = vmul.f32 %v1497_v36, %v1474_v49 }
 0x133   : > { %624 = vadd.xlane.f32.xlu0 %v599_v62  ;;  %620 = vadd.xlane.f32.xlu1 %v597_v53  ;;  %1502 = vtanh.f32 %v569_v35  ;;  %v602_v15 = vmul.f32 %v1499_v1, %v1960_v38  ;;  %v669_v9 = vmul.f32 %v1499_v1, %v1474_v49 }
 0x134   : > { %1504 = vtanh.f32 %v570_v42 }
 0x135   : > { %v528_v39 = vpop.permute.xlu1 %527 }
 0x136   : > { %v552_v11 = vmul.f32 %v1939_v14, %v528_v39 }
 0x138   : > { %v1501_v54 = vpop.eup %1500  ;;  %v568_v52 = vadd.f32 %v552_v11, %v470_v4 }
 0x139   : > { %628 = vadd.xlane.f32.xlu2 %v601_v41  ;;  %v600_v50 = vmul.f32 %v1501_v54, %v1960_v38  ;;  %v1503_v59 = vpop.eup %1502  ;;  %v667_v44 = vmul.f32 %v1501_v54, %v1474_v49 }
 0x13a   : > { %1506 = vtanh.f32 %v568_v52  ;;  %v1505_v45 = vpop.eup %1504  ;;  %v604_v60 = vmul.f32 %v1503_v59, %v1960_v38  ;;  %v671_v57 = vmul.f32 %v1503_v59, %v1474_v49 }
 0x13b   : > { %630 = vadd.xlane.f32.xlu0 %v602_v15  ;;  %626 = vadd.xlane.f32.xlu1 %v600_v50  ;;  %v605_v14 = vmul.f32 %v1505_v45, %v1960_v38  ;;  %v672_v8 = vmul.f32 %v1505_v45, %v1474_v49 }
 0x140   : > { %v1507_v48 = vpop.eup %1506 }
 0x141   : > { %634 = vadd.xlane.f32.xlu2 %v604_v60  ;;  %v603_v37 = vmul.f32 %v1507_v48, %v1960_v38  ;;  %v662_v38 = vmul.f32 %v2012_v2, %v1474_v49  ;;  %v670_v2 = vmul.f32 %v1507_v48, %v1474_v49 }
 0x143   : > { %636 = vadd.xlane.f32.xlu0 %v605_v14  ;;  %632 = vadd.xlane.f32.xlu1 %v603_v37 }
 0x149   : > { %675 = vadd.xlane.f32.xlu2 %v658_v33 }
 0x14b   : > { %677 = vadd.xlane.f32.xlu0 %v659_v58  ;;  %673 = vadd.xlane.f32.xlu1 %v657_v3 }
 0x151   : > { %681 = vadd.xlane.f32.xlu2 %v661_v6 }
 0x153   : > { %683 = vadd.xlane.f32.xlu0 %v662_v38  ;;  %679 = vadd.xlane.f32.xlu1 %v660_v7 }
 0x159   : > { %687 = vadd.xlane.f32.xlu2 %v664_v46 }
 0x15b   : > { %689 = vadd.xlane.f32.xlu0 %v665_v55  ;;  %685 = vadd.xlane.f32.xlu1 %v663_v31 }
 0x161   : > { %693 = vadd.xlane.f32.xlu2 %v667_v44 }
 0x163   : > { %695 = vadd.xlane.f32.xlu0 %v668_v26  ;;  %691 = vadd.xlane.f32.xlu1 %v666_v5 }
 0x169   : > { %699 = vadd.xlane.f32.xlu2 %v670_v2 }
 0x16b   : > { %701 = vadd.xlane.f32.xlu0 %v671_v57  ;;  %697 = vadd.xlane.f32.xlu1 %v669_v9 }
 0x173   : > { %703 = vadd.xlane.f32.xlu1 %v672_v8 }
 0x184   : > { %v2079_v16 = vpop.xlane.xlu1 %606 }
 0x185   : > { %v639_v58 = vadd.f32 %v2110_v51, %v2079_v16 }
 0x18c   : > { %v2075_v10 = vpop.xlane.xlu2 %608 }
 0x194   : > { %v2077_v12 = vpop.xlane.xlu2 %612 }
 0x196   : > { %v2081_v17 = vpop.xlane.xlu0 %610 }
 0x19c   : > { %v2083_v18 = vpop.xlane.xlu2 %616 }
 0x19e   : > { %v2085_v43 = vpop.xlane.xlu0 %618  ;;  %v2087_v56 = vpop.xlane.xlu1 %614 }
 0x19f   : > { %v643_v46 = vadd.f32 %v2110_v51, %v2087_v56 }
 0x1a4   : > { %v2089_v28 = vpop.xlane.xlu2 %622 }
 0x1a6   : > { %v2091_v19 = vpop.xlane.xlu0 %624  ;;  %v2093_v23 = vpop.xlane.xlu1 %620 }
 0x1a7   : > { %v646_v57 = vadd.f32 %v2110_v51, %v2093_v23 }
 0x1ac   : > { %v2095_v20 = vpop.xlane.xlu2 %628 }
 0x1ae   : > { %v2097_v0 = vpop.xlane.xlu0 %630  ;;  %v2099_v47 = vpop.xlane.xlu1 %626 }
 0x1af   : > { %v649_v23 = vadd.f32 %v2110_v51, %v2099_v47 }
 0x1b4   : > { %v2101_v24 = vpop.xlane.xlu2 %634 }
 0x1b6   : > { %v2103_v25 = vpop.xlane.xlu0 %636  ;;  %v2105_v13 = vpop.xlane.xlu1 %632 }
 0x1bc   : > { %v676_v32 = vpop.xlane.xlu2 %675 }
 0x1bd   : > { %v706_v21 = vadd.f32 %v2110_v51, %v676_v32 }
 0x1be   : > { %v678_v63 = vpop.xlane.xlu0 %677  ;;  %v674_v27 = vpop.xlane.xlu1 %673 }
 0x1bf   : > { %v707_v40 = vadd.f32 %v2110_v51, %v678_v63  ;;  %v705_v42 = vadd.f32 %v2110_v51, %v674_v27  ;;  %739 = vrot.lane.b32.xlu0 %v706_v21, %s1640_s23  ;;  %v640_v21 = vadd.f32 %v2110_v51, %v2075_v10  ;;  %v641_v27 = vadd.f32 %v2110_v51, %v2081_v17 }
 0x1c1   : > { %741 = vrot.lane.b32.xlu1 %v707_v40, %s1640_s23  ;;  %737 = vrot.lane.b32.xlu2 %v705_v42, %s1640_s23 }
 0x1c4   : > { %v682_v29 = vpop.xlane.xlu2 %681 }
 0x1c5   : > { %v709_v34 = vadd.f32 %v2110_v51, %v682_v29 }
 0x1c6   : > { %v684_v30 = vpop.xlane.xlu0 %683  ;;  %v680_v22 = vpop.xlane.xlu1 %679 }
 0x1c7   : > { %v710_v62 = vadd.f32 %v2110_v51, %v684_v30  ;;  %v708_v53 = vadd.f32 %v2110_v51, %v680_v22 }
 0x1c9   : > { %747 = vrot.lane.b32.xlu1 %v710_v62, %s1640_s23  ;;  %745 = vrot.lane.b32.xlu2 %v709_v34, %s1640_s23 }
 0x1ca   : > { %743 = vrot.lane.b32.xlu0 %v708_v53, %s1640_s23 }
 0x1cc   : > { %v688_v61 = vpop.xlane.xlu2 %687 }
 0x1cd   : > { %v712_v39 = vadd.f32 %v2110_v51, %v688_v61 }
 0x1ce   : > { %v690_v35 = vpop.xlane.xlu0 %689  ;;  %v686_v36 = vpop.xlane.xlu1 %685 }
 0x1cf   : > { %v713_v1 = vadd.f32 %v2110_v51, %v690_v35  ;;  %v711_v4 = vadd.f32 %v2110_v51, %v686_v36 }
 0x1d1   : > { %753 = vrot.lane.b32.xlu1 %v713_v1, %s1640_s23  ;;  %751 = vrot.lane.b32.xlu2 %v712_v39, %s1640_s23 }
 0x1d2   : > { %749 = vrot.lane.b32.xlu0 %v711_v4, %s1640_s23 }
 0x1d4   : > { %v694_v11 = vpop.xlane.xlu2 %693 }
 0x1d5   : > { %v715_v52 = vadd.f32 %v2110_v51, %v694_v11 }
 0x1d6   : > { %v696_v41 = vpop.xlane.xlu0 %695  ;;  %v692_v54 = vpop.xlane.xlu1 %691 }
 0x1d7   : > { %v716_v15 = vadd.f32 %v2110_v51, %v696_v41  ;;  %v714_v50 = vadd.f32 %v2110_v51, %v692_v54 }
 0x1d9   : > { %759 = vrot.lane.b32.xlu1 %v716_v15, %s1640_s23  ;;  %757 = vrot.lane.b32.xlu2 %v715_v52, %s1640_s23  ;;  %v644_v15 = vadd.f32 %v2110_v51, %v2083_v18 }
 0x1da   : > { %755 = vrot.lane.b32.xlu0 %v714_v50, %s1640_s23 }
 0x1dc   : > { %v700_v59 = vpop.xlane.xlu2 %699 }
 0x1dd   : > { %v718_v48 = vadd.f32 %v2110_v51, %v700_v59 }
 0x1de   : > { %v702_v45 = vpop.xlane.xlu0 %701  ;;  %v698_v60 = vpop.xlane.xlu1 %697 }
 0x1df   : > { %v719_v14 = vadd.f32 %v2110_v51, %v702_v45  ;;  %v717_v37 = vadd.f32 %v2110_v51, %v698_v60  ;;  %v652_v45 = vadd.f32 %v2110_v51, %v2105_v13 }
 0x1e1   : > { %765 = vrot.lane.b32.xlu1 %v719_v14, %s1640_s23  ;;  %763 = vrot.lane.b32.xlu2 %v718_v48, %s1640_s23  ;;  %v642_v48 = vadd.f32 %v2110_v51, %v2077_v12  ;;  %v645_v12 = vadd.f32 %v2110_v51, %v2085_v43  ;;  %v2192_v43 = vadd.f32 %v2110_v51, %v2097_v0 }
 0x1e2   : > { %761 = vrot.lane.b32.xlu0 %v717_v37, %s1640_s23 }
 0x1e6   : > { %v704_v49 = vpop.xlane.xlu1 %703 }
 0x1e7   : > { %v720_v33 = vadd.f32 %v2110_v51, %v704_v49 }
 0x1ea   : > { %767 = vrot.lane.b32.xlu0 %v720_v33, %s1640_s23 }
 0x21b   : > { %v738_v3 = vpop.permute.xlu2 %737 }
 0x21c   : > { %v785_v6 = vsub.f32 %v639_v58, %v738_v3 }
 0x21e   : > { %v801_v38 = vsub.f32 0.0, %v785_v6 }
 0x220   : > { %v817_v7 = vmul.f32 1.442695, %v801_v38 }
 0x222   : > { %1508 = vpow2.f32 %v817_v7  ;;  %v647_v7 = vadd.f32 %v2110_v51, %v2089_v28  ;;  %v2198_v28 = vadd.f32 %v2110_v51, %v2101_v24 }
 0x223   : > { %v746_v55 = vpop.permute.xlu2 %745 }
 0x224   : > { %v789_v31 = vsub.f32 %v643_v46, %v746_v55 }
 0x226   : > { %v805_v44 = vsub.f32 0.0, %v789_v31 }
 0x228   : > { %v1509_v26 = vpop.eup %1508  ;;  %v825_v5 = vmul.f32 1.442695, %v805_v44 }
 0x229   : > { %v849_v2 = vadd.f32 1.0, %v1509_v26  ;;  %v2184_v26 = vadd.f32 %v2110_v51, %v2091_v19 }
 0x22a   : > { %1510 = vpow2.f32 %v825_v5  ;;  %v2188_v5 = vadd.f32 %v2110_v51, %v2095_v20  ;;  %v2205_v20 = vadd.f32 %v2110_v51, %v2103_v25 }
 0x22b   : > { %1512 = vrcp.f32 %v849_v2  ;;  %v752_v9 = vpop.permute.xlu2 %751  ;;  %v874_v35 = vand.u32 2147483647, %v849_v2  ;;  %v876_v17 = vand.u32 2147483648, %v849_v2  ;;  %vm870_vm1 = vweird.f32 %v849_v2 }
 0x22c   : > { %v792_v8 = vsub.f32 %v646_v57, %v752_v9 }
 0x22d   : > { %v877_v59 = vor.u32 1.1754944e-38, %v876_v17  ;;  %vm875_vm3 = vcmp.eq.f32.partialorder %v874_v35, 8.507059e+37 }
 0x22e   : > { %v808_v16 = vsub.f32 0.0, %v792_v8 }
 0x230   : > { %v1511_v32 = vpop.eup %1510  ;;  %v831_v56 = vmul.f32 1.442695, %v808_v16 }
 0x231   : > { %v1513_v63 = vpop.eup %1512  ;;  %v2154_v40 = vadd.f32 1.0, %v1511_v32  ;;  %v740_v42 = vpop.permute.xlu0 %739 }
 0x232   : > { %1514 = vpow2.f32 %v831_v56  ;;  %v786_v29 = vsub.f32 %v640_v21, %v740_v42  ;;  %v866_v30 = vmul.f32 %v1513_v63, %v849_v2  ;;  %vm871_vm0 = vweird.f32 %v1513_v63 }
 0x233   : > { %1516 = vrcp.f32 %v2154_v40  ;;  %v758_v22 = vpop.permute.xlu2 %757  ;;  %v742_v34 = vpop.permute.xlu1 %741  ;;  %vm872_vm2 = vmor %vm870_vm1, %vm871_vm0  ;;  %v930_v0 = vand.u32 2147483647, %v2154_v40  ;;  %v932_v32 = vand.u32 2147483648, %v2154_v40  ;;  %vm926_vm4 = vweird.f32 %v2154_v40 }
 0x234   : > { %v802_v62 = vsub.f32 0.0, %v786_v29  ;;  %v795_v10 = vsub.f32 %v649_v23, %v758_v22  ;;  %v787_v53 = vsub.f32 %v641_v27, %v742_v34  ;;  %v867_v61 = vsub.f32 1.0, %v866_v30 }
 0x235   : > { %vm2220_vm5 = vcmp.eq.f32.partialorder %v930_v0, 8.507059e+37 }
 0x236   : > { %v819_v36 = vmul.f32 1.442695, %v802_v62  ;;  %v811_v39 = vsub.f32 0.0, %v795_v10  ;;  %v803_v1 = vsub.f32 0.0, %v787_v53  ;;  %v868_v4 = vmul.f32 %v1513_v63, %v867_v61 }
 0x237   : > { %v933_v62 = vor.u32 1.1754944e-38, %v932_v32 }
 0x238   : > { %v1515_v47 = vpop.eup %1514  ;;  %1518 = vpow2.f32 %v819_v36  ;;  %v837_v11 = vmul.f32 1.442695, %v811_v39  ;;  %v821_v41 = vmul.f32 1.442695, %v803_v1  ;;  %v869_v54 = vadd.f32 %v1513_v63, %v868_v4 }
 0x239   : > { %v2159_v52 = vpop.eup %1516  ;;  %v2163_v50 = vadd.f32 1.0, %v1515_v47 }
 0x23a   : > { %1520 = vpow2.f32 %v837_v11  ;;  %v873_v60 = vsel %vm872_vm2, %v1513_v63, %v869_v54  ;;  %v922_v18 = vmul.f32 %v2159_v52, %v2154_v40  ;;  %vm927_vm6 = vweird.f32 %v2159_v52 }
 0x23b   : > { %1522 = vrcp.f32 %v2163_v50  ;;  %v764_v14 = vpop.permute.xlu2 %763  ;;  %v748_v37 = vpop.permute.xlu1 %747  ;;  %v2171_v49 = vsel %vm875_vm3, %v877_v59, %v873_v60  ;;  %v974_v25 = vand.u32 2147483648, %v2163_v50  ;;  %v972_v35 = vand.u32 2147483647, %v2163_v50  ;;  %vm2243_vm10 = vmor %vm926_vm4, %vm927_vm6 }
 0x23c   : > { %1524 = vpow2.f32 %v821_v41  ;;  %v798_v33 = vsub.f32 %v652_v45, %v764_v14  ;;  %v744_v58 = vpop.permute.xlu0 %743  ;;  %v790_v3 = vsub.f32 %v644_v15, %v748_v37  ;;  %1110 = vperm.xlu2 %1466, %v2171_v49   ;;  %v923_v31 = vsub.f32 1.0, %v922_v18 }
 0x23d   : > { %v788_v13 = vsub.f32 %v642_v48, %v744_v58  ;;  %v2228_v39 = vor.u32 1.1754944e-38, %v974_v25  ;;  %vm968_vm13 = vweird.f32 %v2163_v50  ;;  %vm2275_vm1 = vcmp.eq.f32.partialorder %v972_v35, 8.507059e+37 }
 0x23e   : > { %v1519_v6 = vpop.eup %1518  ;;  %v806_v38 = vsub.f32 0.0, %v790_v3  ;;  %v814_v2 = vsub.f32 0.0, %v798_v33  ;;  %v924_v56 = vmul.f32 %v2159_v52, %v923_v31 }
 0x23f   : > { %v2180_v46 = vadd.f32 1.0, %v1519_v6  ;;  %v804_v55 = vsub.f32 0.0, %v788_v13 }
 0x240   : > { %v1521_v44 = vpop.eup %1520  ;;  %v827_v16 = vmul.f32 1.442695, %v806_v38  ;;  %v843_v63 = vmul.f32 1.442695, %v814_v2  ;;  %v925_v61 = vadd.f32 %v2159_v52, %v924_v56 }
 0x241   : > { %v2194_v57 = vpop.eup %1522  ;;  %1526 = vrcp.f32 %v2180_v46  ;;  %v2201_v9 = vadd.f32 1.0, %v1521_v44  ;;  %v823_v19 = vmul.f32 1.442695, %v804_v55  ;;  %v888_v23 = vand.u32 2147483647, %v2180_v46 }
 0x242   : > { %v1525_v8 = vpop.eup %1524  ;;  %v964_v29 = vmul.f32 %v2194_v57, %v2163_v50  ;;  %v890_v22 = vand.u32 2147483648, %v2180_v46  ;;  %vm884_vm7 = vweird.f32 %v2180_v46  ;;  %vm969_vm11 = vweird.f32 %v2194_v57 }
 0x243   : > { %1528 = vrcp.f32 %v2201_v9  ;;  %v2210_v21 = vadd.f32 1.0, %v1525_v8  ;;  %v754_v24 = vpop.permute.xlu1 %753  ;;  %vm2233_vm8 = vcmp.eq.f32.partialorder %v888_v23, 8.507059e+37  ;;  %v929_v37 = vsel %vm2243_vm10, %v2159_v52, %v925_v61  ;;  %vm2309_vm3 = vmor %vm968_vm13, %vm969_vm11 }
 0x244   : > { %1530 = vpow2.f32 %v823_v19  ;;  %v750_v27 = vpop.permute.xlu0 %749  ;;  %v793_v42 = vsub.f32 %v647_v7, %v754_v24  ;;  %v965_v11 = vsub.f32 1.0, %v964_v29  ;;  %v891_v15 = vor.u32 1.1754944e-38, %v890_v22 }
 0x245   : > { %1532 = vrcp.f32 %v2210_v21  ;;  %v791_v51 = vsub.f32 %v645_v12, %v750_v27  ;;  %vm898_vm9 = vweird.f32 %v2210_v21  ;;  %v902_v59 = vand.u32 2147483647, %v2210_v21 }
 0x246   : > { %1534 = vpow2.f32 %v827_v16  ;;  %v809_v30 = vsub.f32 0.0, %v793_v42  ;;  %v904_v6 = vand.u32 2147483648, %v2210_v21  ;;  %v966_v12 = vmul.f32 %v2194_v57, %v965_v11 }
 0x247   : > { %v1527_v10 = vpop.eup %1526  ;;  %v807_v53 = vsub.f32 0.0, %v791_v51  ;;  %1536 = vpow2.f32 %v843_v63  ;;  %vm2265_vm15 = vcmp.eq.f32.partialorder %v902_v59, 8.507059e+37  ;;  %vm1010_vm6 = vweird.f32 %v2201_v9 }
 0x248   : > { %v833_v17 = vmul.f32 1.442695, %v809_v30  ;;  %v880_v36 = vmul.f32 %v1527_v10, %v2180_v46  ;;  %vm885_vm12 = vweird.f32 %v1527_v10  ;;  %v905_v63 = vor.u32 1.1754944e-38, %v904_v6 }
 0x249   : > { %v2230_v1 = vpop.eup %1528  ;;  %v829_v4 = vmul.f32 1.442695, %v807_v53  ;;  %vm886_vm14 = vmor %vm884_vm7, %vm885_vm12  ;;  %v967_v51 = vadd.f32 %v2194_v57, %v966_v12 }
 0x24a   : > { %v1531_v41 = vpop.eup %1530  ;;  %v881_v54 = vsub.f32 1.0, %v880_v36  ;;  %1538 = vpow2.f32 %v833_v17  ;;  %v1006_v2 = vmul.f32 %v2230_v1, %v2201_v9  ;;  %vm1011_vm7 = vweird.f32 %v2230_v1 }
 0x24b   : > { %v1533_v60 = vpop.eup %1532  ;;  %v2248_v48 = vadd.f32 1.0, %v1531_v41  ;;  %v760_v14 = vpop.permute.xlu1 %759  ;;  %1540 = vpow2.f32 %v829_v4 }
 0x24c   : > { %v1535_v18 = vpop.eup %1534  ;;  %v756_v33 = vpop.permute.xlu0 %755  ;;  %v796_v40 = vsub.f32 %v2188_v5, %v760_v14  ;;  %v882_v58 = vmul.f32 %v1527_v10, %v881_v54  ;;  %v894_v3 = vmul.f32 %v1533_v60, %v2210_v21  ;;  %vm899_vm0 = vweird.f32 %v1533_v60 }
 0x24d   : > { %1542 = vrcp.f32 %v2248_v48  ;;  %v794_v13 = vsub.f32 %v2184_v26, %v756_v33  ;;  %v1537_v38 = vpop.eup %1536  ;;  %v2260_v52 = vadd.f32 1.0, %v1535_v18  ;;  %v2271_v26 = vsel %vm2220_vm5, %v933_v62, %v929_v37  ;;  %vm900_vm2 = vmor %vm898_vm9, %vm899_vm0 }
 0x24e   : > { %v812_v7 = vsub.f32 0.0, %v796_v40  ;;  %v883_v55 = vadd.f32 %v1527_v10, %v882_v58  ;;  %v895_v31 = vsub.f32 1.0, %v894_v3  ;;  %v2279_v32 = vadd.f32 1.0, %v1537_v38 }
 0x24f   : > { %v810_v44 = vsub.f32 0.0, %v794_v13  ;;  %1544 = vrcp.f32 %v2260_v52  ;;  %v916_v25 = vand.u32 2147483647, %v2248_v48  ;;  %v918_v22 = vand.u32 2147483648, %v2248_v48 }
 0x250   : > { %v839_v19 = vmul.f32 1.442695, %v812_v7  ;;  %v887_v8 = vsel %vm886_vm14, %v1527_v10, %v883_v55  ;;  %v896_v16 = vmul.f32 %v1533_v60, %v895_v31  ;;  %v1539_v46 = vpop.eup %1538  ;;  %v1007_v34 = vsub.f32 1.0, %v1006_v2  ;;  %vm2375_vm14 = vmor %vm1010_vm6, %vm1011_vm7 }
 0x251   : > { %v835_v24 = vmul.f32 1.442695, %v810_v44  ;;  %v2283_v56 = vsel %vm2233_vm8, %v891_v15, %v887_v8  ;;  %v1541_v27 = vpop.eup %1540  ;;  %v2298_v35 = vadd.f32 1.0, %v1539_v46  ;;  %vm912_vm4 = vweird.f32 %v2248_v48 }
 0x252   : > { %1115 = vperm.xlu1 %1467, %v2283_v56   ;;  %v897_v42 = vadd.f32 %v1533_v60, %v896_v16  ;;  %v2289_v29 = vadd.f32 1.0, %v1541_v27  ;;  %1546 = vpow2.f32 %v839_v19  ;;  %vm2319_vm5 = vcmp.eq.f32.partialorder %v916_v25, 8.507059e+37 }
 0x253   : > { %v1543_v23 = vpop.eup %1542  ;;  %v766_v30 = vpop.permute.xlu1 %765  ;;  %1548 = vpow2.f32 %v835_v24  ;;  %v1008_v15 = vmul.f32 %v2230_v1, %v1007_v34  ;;  %v919_v45 = vor.u32 1.1754944e-38, %v918_v22  ;;  %v1016_v31 = vand.u32 2147483648, %v2201_v9 }
 0x254   : > { %v762_v62 = vpop.permute.xlu0 %761  ;;  %v799_v10 = vsub.f32 %v2198_v28, %v766_v30  ;;  %v901_v53 = vsel %vm900_vm2, %v1533_v60, %v897_v42  ;;  %v908_v61 = vmul.f32 %v1543_v23, %v2248_v48  ;;  %1550 = vrcp.f32 %v2289_v29 }
 0x255   : > { %v797_v17 = vsub.f32 %v2192_v43, %v762_v62  ;;  %v2303_v21 = vsel %vm2265_vm15, %v905_v63, %v901_v53  ;;  %1552 = vrcp.f32 %v2279_v32  ;;  %v971_v43 = vsel %vm2309_vm3, %v2194_v57, %v967_v51  ;;  %v2325_v50 = vpop.eup %1544 }
 0x256   : > { %v815_v28 = vsub.f32 0.0, %v799_v10  ;;  %1120 = vperm.xlu0 %1465, %v2303_v21   ;;  %v909_v4 = vsub.f32 1.0, %v908_v61  ;;  %vm913_vm8 = vweird.f32 %v1543_v23  ;;  %1554 = vrcp.f32 %v2298_v35 }
 0x257   : > { %v813_v47 = vsub.f32 0.0, %v797_v17  ;;  %v2332_v60 = vsel %vm2275_vm1, %v2228_v39, %v971_v43  ;;  %vm954_vm9 = vweird.f32 %v2289_v29  ;;  %v958_v18 = vand.u32 2147483647, %v2289_v29  ;;  %vm914_vm10 = vmor %vm912_vm4, %vm913_vm8 }
 0x258   : > { %v845_v41 = vmul.f32 1.442695, %v815_v28  ;;  %v910_v54 = vmul.f32 %v1543_v23, %v909_v4  ;;  %v1547_v59 = vpop.eup %1546  ;;  %v960_v58 = vand.u32 2147483648, %v2289_v29  ;;  %v1014_v39 = vand.u32 2147483647, %v2201_v9 }
 0x259   : > { %v841_v57 = vmul.f32 1.442695, %v813_v47  ;;  %v1549_v14 = vpop.eup %1548  ;;  %v936_v3 = vmul.f32 %v2325_v50, %v2260_v52  ;;  %v1009_v7 = vadd.f32 %v2230_v1, %v1008_v15  ;;  %v2357_v44 = vadd.f32 1.0, %v1547_v59 }
 0x25a   : > { %1556 = vpow2.f32 %v845_v41  ;;  %1130 = vperm.xlu1 %1467, %v2271_v26   ;;  %v911_v37 = vadd.f32 %v1543_v23, %v910_v54  ;;  %v1551_v33 = vpop.eup %1550  ;;  %v2337_v40 = vadd.f32 1.0, %v1549_v14  ;;  %vm2361_vm11 = vcmp.eq.f32.partialorder %v958_v18, 8.507059e+37 }
 0x25b   : > { %v2346_v13 = vpop.eup %1552  ;;  %1558 = vpow2.f32 %v841_v57  ;;  %v950_v38 = vmul.f32 %v1551_v33, %v2289_v29  ;;  %v937_v19 = vsub.f32 1.0, %v936_v3  ;;  %vm955_vm12 = vweird.f32 %v1551_v33 }
 0x25c   : > { %v768_v6 = vpop.permute.xlu0 %767  ;;  %v915_v12 = vsel %vm914_vm10, %v1543_v23, %v911_v37  ;;  %1560 = vrcp.f32 %v2337_v40  ;;  %v2365_v8 = vpop.eup %1554  ;;  %v961_v16 = vor.u32 1.1754944e-38, %v960_v58  ;;  %vm2367_vm13 = vcmp.eq.f32.partialorder %v1014_v39, 8.507059e+37  ;;  %vm956_vm0 = vmor %vm954_vm9, %vm955_vm12 }
 0x25d   : > { %v800_v48 = vsub.f32 %v2205_v20, %v768_v6  ;;  %v2354_v55 = vsel %vm2319_vm5, %v919_v45, %v915_v12  ;;  %v951_v5 = vsub.f32 1.0, %v950_v38  ;;  %v938_v27 = vmul.f32 %v2325_v50, %v937_v19 }
 0x25e   : > { %1125 = vperm.xlu2 %1466, %v2354_v55   ;;  %1145 = vperm.xlu0 %1465, %v2332_v60   ;;  %vm941_vm15 = vweird.f32 %v2325_v50  ;;  %v946_v42 = vand.u32 2147483648, %v2260_v52  ;;  %v1013_v51 = vsel %vm2375_vm14, %v2230_v1, %v1009_v7  ;;  %v1017_v23 = vor.u32 1.1754944e-38, %v1016_v31 }
 0x25f   : > { %v816_v20 = vsub.f32 0.0, %v800_v48  ;;  %v952_v24 = vmul.f32 %v1551_v33, %v951_v5  ;;  %v944_v30 = vand.u32 2147483647, %v2260_v52  ;;  %v939_v62 = vadd.f32 %v2325_v50, %v938_v27 }
 0x260   : > { %v1557_v46 = vpop.eup %1556  ;;  %vm940_vm1 = vweird.f32 %v2260_v52  ;;  %v947_v61 = vor.u32 1.1754944e-38, %v946_v42  ;;  %v1000_v17 = vand.u32 2147483647, %v2337_v40  ;;  %v1002_v36 = vand.u32 2147483648, %v2337_v40 }
 0x261   : > { %v847_v25 = vmul.f32 1.442695, %v816_v20  ;;  %v1559_v22 = vpop.eup %1558  ;;  %v2386_v9 = vadd.f32 1.0, %v1557_v46  ;;  %v953_v34 = vadd.f32 %v1551_v33, %v952_v24  ;;  %vm2395_vm2 = vmor %vm940_vm1, %vm941_vm15  ;;  %v2412_v43 = vsel %vm2367_vm13, %v1017_v23, %v1013_v51 }
 0x262   : > { %v1561_v10 = vpop.eup %1560  ;;  %v2393_v53 = vadd.f32 1.0, %v1559_v22  ;;  %v943_v29 = vsel %vm2395_vm2, %v2325_v50, %v939_v62  ;;  %vm945_vm3 = vcmp.eq.f32.partialorder %v944_v30, 8.507059e+37  ;;  %vm996_vm4 = vweird.f32 %v2337_v40 }
 0x263   : > { %1562 = vpow2.f32 %v847_v25  ;;  %v957_v28 = vsel %vm956_vm0, %v1551_v33, %v953_v34  ;;  %v992_v52 = vmul.f32 %v1561_v10, %v2337_v40  ;;  %v2417_v47 = vsel %vm945_vm3, %v947_v61, %v943_v29 }
 0x264   : > { %1564 = vrcp.f32 %v2393_v53  ;;  %v2408_v4 = vsel %vm2361_vm11, %v961_v16, %v957_v28  ;;  %vm997_vm5 = vweird.f32 %v1561_v10  ;;  %vm2422_vm6 = vcmp.eq.f32.partialorder %v1000_v17, 8.507059e+37 }
 0x265   : > { %1566 = vrcp.f32 %v2357_v44  ;;  %1140 = vperm.xlu1 %1467, %v2408_v4   ;;  %v993_v11 = vsub.f32 1.0, %v992_v52  ;;  %v1048_v41 = vmul.f32 %v2346_v13, %v2279_v32  ;;  %v1003_v15 = vor.u32 1.1754944e-38, %v1002_v36  ;;  %vm998_vm10 = vmor %vm996_vm4, %vm997_vm5 }
 0x266   : > { %1160 = vperm.xlu0 %1465, %v2412_v43   ;;  %1568 = vrcp.f32 %v2386_v9  ;;  %1135 = vperm.xlu2 %1466, %v2417_v47   ;;  %v1056_v59 = vand.u32 2147483647, %v2279_v32  ;;  %v978_v57 = vmul.f32 %v2365_v8, %v2298_v35  ;;  %vm1052_vm7 = vweird.f32 %v2279_v32 }
 0x267   : > { %v994_v54 = vmul.f32 %v1561_v10, %v993_v11  ;;  %v1049_v45 = vsub.f32 1.0, %v1048_v41  ;;  %vm1053_vm8 = vweird.f32 %v2346_v13  ;;  %v1058_v14 = vand.u32 2147483648, %v2279_v32 }
 0x268   : > { %v979_v33 = vsub.f32 1.0, %v978_v57  ;;  %vm982_vm9 = vweird.f32 %v2298_v35  ;;  %v986_v58 = vand.u32 2147483647, %v2298_v35  ;;  %vm983_vm11 = vweird.f32 %v2365_v8  ;;  %vm1054_vm13 = vmor %vm1052_vm7, %vm1053_vm8 }
 0x269   : > { %v1563_v37 = vpop.eup %1562  ;;  %v995_v18 = vadd.f32 %v1561_v10, %v994_v54  ;;  %v1050_v6 = vmul.f32 %v2346_v13, %v1049_v45  ;;  %v988_v12 = vand.u32 2147483648, %v2298_v35  ;;  %vm2444_vm12 = vcmp.eq.f32.partialorder %v1056_v59, 8.507059e+37  ;;  %vm984_vm15 = vmor %vm982_vm9, %vm983_vm11 }
 0x26a   : > { %v1565_v39 = vpop.eup %1564  ;;  %v2436_v3 = vadd.f32 1.0, %v1563_v37  ;;  %v980_v31 = vmul.f32 %v2365_v8, %v979_v33  ;;  %v1059_v20 = vor.u32 1.1754944e-38, %v1058_v14  ;;  %vm987_vm14 = vcmp.eq.f32.partialorder %v986_v58, 8.507059e+37 }
 0x26b   : > { %v1567_v38 = vpop.eup %1566  ;;  %v999_v7 = vsel %vm998_vm10, %v1561_v10, %v995_v18  ;;  %v1034_v5 = vmul.f32 %v1565_v39, %v2393_v53  ;;  %v1051_v19 = vadd.f32 %v2346_v13, %v1050_v6  ;;  %v989_v0 = vor.u32 1.1754944e-38, %v988_v12 }
 0x26c   : > { %v2450_v2 = vpop.eup %1568  ;;  %1570 = vrcp.f32 %v2436_v3  ;;  %v2455_v40 = vsel %vm2422_vm6, %v1003_v15, %v999_v7  ;;  %v981_v16 = vadd.f32 %v2365_v8, %v980_v31  ;;  %v1042_v63 = vand.u32 2147483647, %v2393_v53 }
 0x26d   : > { %1155 = vperm.xlu1 %1467, %v2455_v40   ;;  %v1035_v46 = vsub.f32 1.0, %v1034_v5  ;;  %v1055_v24 = vsel %vm1054_vm13, %v2346_v13, %v1051_v19  ;;  %v1044_v27 = vand.u32 2147483648, %v2393_v53  ;;  %v1020_v42 = vmul.f32 %v1567_v38, %v2357_v44 }
 0x26e   : > { %v2474_v32 = vsel %vm2444_vm12, %v1059_v20, %v1055_v24  ;;  %v985_v25 = vsel %vm984_vm15, %v2365_v8, %v981_v16  ;;  %vm1039_vm0 = vweird.f32 %v1565_v39  ;;  %vm1038_vm1 = vweird.f32 %v2393_v53 }
 0x26f   : > { %v1036_v51 = vmul.f32 %v1565_v39, %v1035_v46  ;;  %1175 = vperm.xlu0 %1465, %v2474_v32   ;;  %v2478_v13 = vsel %vm987_vm14, %v989_v0, %v985_v25  ;;  %v1021_v23 = vsub.f32 1.0, %v1020_v42  ;;  %vm1040_vm2 = vmor %vm1038_vm1, %vm1039_vm0  ;;  %vm1043_vm3 = vcmp.eq.f32.partialorder %v1042_v63, 8.507059e+37 }
 0x270   : > { %1150 = vperm.xlu2 %1466, %v2478_v13   ;;  %v1045_v22 = vor.u32 1.1754944e-38, %v1044_v27  ;;  %vm1025_vm4 = vweird.f32 %v1567_v38  ;;  %v1030_v34 = vand.u32 2147483648, %v2357_v44  ;;  %v1028_v10 = vand.u32 2147483647, %v2357_v44 }
 0x271   : > { %v1037_v35 = vadd.f32 %v1565_v39, %v1036_v51  ;;  %v1022_v62 = vmul.f32 %v1567_v38, %v1021_v23  ;;  %v1089_v17 = vsub.f32 1.0, %v2171_v49  ;;  %vm1024_vm5 = vweird.f32 %v2357_v44 }
 0x272   : > { %v1571_v30 = vpop.eup %1570  ;;  %vm1026_vm6 = vmor %vm1024_vm5, %vm1025_vm4  ;;  %v1031_v28 = vor.u32 1.1754944e-38, %v1030_v34  ;;  %v1084_v29 = vand.u32 2147483647, %v2436_v3  ;;  %v1086_v52 = vand.u32 2147483648, %v2436_v3  ;;  %v1062_v11 = vmul.f32 %v2450_v2, %v2386_v9 }
 0x273   : > { %v1041_v8 = vsel %vm1040_vm2, %v1565_v39, %v1037_v35  ;;  %v1076_v1 = vmul.f32 %v1571_v30, %v2436_v3  ;;  %v1023_v36 = vadd.f32 %v1567_v38, %v1022_v62  ;;  %vm1029_vm7 = vcmp.eq.f32.partialorder %v1028_v10, 8.507059e+37 }
 0x274   : > { %v1046_v61 = vsel %vm1043_vm3, %v1045_v22, %v1041_v8  ;;  %vm1081_vm8 = vweird.f32 %v1571_v30  ;;  %v1063_v54 = vsub.f32 1.0, %v1062_v11  ;;  %vm1080_vm9 = vweird.f32 %v2436_v3 }
 0x275   : > { %1170 = vperm.xlu1 %1467, %v1046_v61   ;;  %v1077_v53 = vsub.f32 1.0, %v1076_v1  ;;  %v1027_v50 = vsel %vm1026_vm6, %v1567_v38, %v1023_v36  ;;  %vm1082_vm10 = vmor %vm1080_vm9, %vm1081_vm8  ;;  %v1087_v44 = vor.u32 1.1754944e-38, %v1086_v52  ;;  %vm1067_vm11 = vweird.f32 %v2450_v2 }
 0x276   : > { %v1032_v49 = vsel %vm1029_vm7, %v1031_v28, %v1027_v50  ;;  %v1064_v59 = vmul.f32 %v2450_v2, %v1063_v54  ;;  %v1072_v57 = vand.u32 2147483648, %v2386_v9  ;;  %vm1085_vm12 = vcmp.eq.f32.partialorder %v1084_v29, 8.507059e+37 }
 0x277   : > { %v1078_v41 = vmul.f32 %v1571_v30, %v1077_v53  ;;  %1207 = vperm.xlu0 %1465, %v1089_v17   ;;  %v1070_v14 = vand.u32 2147483647, %v2386_v9  ;;  %vm1066_vm13 = vweird.f32 %v2386_v9  ;;  %v1092_v33 = vsub.f32 1.0, %v2354_v55 }
 0x278   : > { %1165 = vperm.xlu2 %1466, %v1032_v49   ;;  %v1065_v18 = vadd.f32 %v2450_v2, %v1064_v59  ;;  %vm1068_vm14 = vmor %vm1066_vm13, %vm1067_vm11  ;;  %v1073_v39 = vor.u32 1.1754944e-38, %v1072_v57  ;;  %v1091_v6 = vsub.f32 1.0, %v2303_v21  ;;  %v1095_v12 = vsub.f32 1.0, %v2408_v4 }
 0x279   : > { %v1079_v15 = vadd.f32 %v1571_v30, %v1078_v41  ;;  %vm1071_vm15 = vcmp.eq.f32.partialorder %v1070_v14, 8.507059e+37  ;;  %v1090_v38 = vsub.f32 1.0, %v2283_v56  ;;  %v1094_v9 = vsub.f32 1.0, %v2417_v47 }
 0x27a   : > { %v1069_v58 = vsel %vm1068_vm14, %v2450_v2, %v1065_v18  ;;  %v1098_v55 = vsub.f32 1.0, %v2455_v40  ;;  %v1093_v7 = vsub.f32 1.0, %v2271_v26  ;;  %v1097_v48 = vsub.f32 1.0, %v2478_v13 }
 0x27b   : > { %v1083_v45 = vsel %vm1082_vm10, %v1571_v30, %v1079_v15  ;;  %v1074_v3 = vsel %vm1071_vm15, %v1073_v39, %v1069_v58  ;;  %v1101_v21 = vsub.f32 1.0, %v1046_v61  ;;  %v1096_v31 = vsub.f32 1.0, %v2332_v60 }
 0x27c   : > { %v1088_v37 = vsel %vm1085_vm12, %v1087_v44, %v1083_v45  ;;  %v1100_v56 = vsub.f32 1.0, %v1032_v49  ;;  %v1099_v47 = vsub.f32 1.0, %v2412_v43  ;;  %v1103_v5 = vsub.f32 1.0, %v1074_v3 }
 0x27d   : > { %1185 = vperm.xlu1 %1467, %v1088_v37   ;;  %v1104_v4 = vsub.f32 1.0, %v1088_v37  ;;  %v1102_v26 = vsub.f32 1.0, %v2474_v32  ;;  %v1105_v27 = vlaneseq }
 0x27f   : > { %1222 = vperm.xlu0 %1465, %v1092_v33   ;;  %v2515_v25 = vand.u32 127, %v1105_v27 }
 0x280   : > { %1180 = vperm.xlu2 %1466, %v1074_v3  }
 0x281   : > { %vm1204_vm0 = vcmp.eq.s32.totalorder %v2515_v25, 1  ;;  %vm1107_vm1 = vcmp.eq.s32.totalorder %v2515_v25, 0 }
 0x285   : > { %1217 = vperm.xlu1 %1467, %v1091_v6  }
 0x287   : > { %1237 = vperm.xlu0 %1465, %v1095_v12  }
 0x288   : > { %1212 = vperm.xlu2 %1466, %v1090_v38  }
 0x28d   : > { %1232 = vperm.xlu1 %1467, %v1094_v9  }
 0x28f   : > { %1252 = vperm.xlu0 %1465, %v1098_v55  }
 0x290   : > { %1227 = vperm.xlu2 %1466, %v1093_v7  }
 0x295   : > { %1247 = vperm.xlu1 %1467, %v1097_v48  }
 0x296   : > { %v1111_v2 = vpop.permute.xlu2 %1110 }
 0x297   : > { %1267 = vperm.xlu0 %1465, %v1101_v21   ;;  %v1188_v22 = vsel %vm1107_vm1, %v1111_v2, 0.0 }
 0x298   : > { %1242 = vperm.xlu2 %1466, %v1096_v31  }
 0x29d   : > { %1262 = vperm.xlu1 %1467, %v1100_v56  }
 0x29f   : > { %1282 = vperm.xlu0 %1465, %v1104_v4  }
 0x2a0   : > { %1257 = vperm.xlu2 %1466, %v1099_v47  }
 0x2a5   : > { %1277 = vperm.xlu1 %1467, %v1103_v5  }
 0x2a8   : > { %1272 = vperm.xlu2 %1466, %v1102_v26  }
 0x2b8   : > { %v1126_v40 = vpop.permute.xlu2 %1125 }
 0x2b9   : > { %v1191_v17 = vsel %vm1107_vm1, %v1126_v40, 0.0 }
 0x2c0   : > { %v1136_v19 = vpop.permute.xlu2 %1135 }
 0x2c1   : > { %v1193_v45 = vsel %vm1107_vm1, %v1136_v19, 0.0 }
 0x2c4   : > { %v1116_v60 = vpop.permute.xlu1 %1115 }
 0x2c5   : > { %v1189_v13 = vsel %vm1107_vm1, %v1116_v60, 0.0 }
 0x2c8   : > { %v1121_v20 = vpop.permute.xlu0 %1120 }
 0x2c9   : > { %v1190_v11 = vsel %vm1107_vm1, %v1121_v20, 0.0 }
 0x2ca   : > { %v1151_v16 = vpop.permute.xlu2 %1150 }
 0x2cb   : > { %v1196_v12 = vsel %vm1107_vm1, %v1151_v16, 0.0 }
 0x2cc   : > { %v1131_v0 = vpop.permute.xlu1 %1130 }
 0x2cd   : > { %v1192_v8 = vsel %vm1107_vm1, %v1131_v0, 0.0 }
 0x2d0   : > { %v1146_v46 = vpop.permute.xlu0 %1145 }
 0x2d1   : > { %v1195_v53 = vsel %vm1107_vm1, %v1146_v46, 0.0 }
 0x2d2   : > { %v2510_v24 = vpop.permute.xlu2 %1165 }
 0x2d3   : > { %v1199_v21 = vsel %vm1107_vm1, %v2510_v24, 0.0 }
 0x2d7   : > { %v1141_v43 = vpop.permute.xlu1 %1140 }
 0x2d8   : > { %v1161_v63 = vpop.permute.xlu0 %1160  ;;  %v1194_v49 = vsel %vm1107_vm1, %v1141_v43, 0.0 }
 0x2d9   : > { %v1198_v15 = vsel %vm1107_vm1, %v1161_v63, 0.0 }
 0x2da   : > { %v2512_v42 = vpop.permute.xlu2 %1180 }
 0x2db   : > { %v1202_v26 = vsel %vm1107_vm1, %v2512_v42, 0.0 }
 0x2df   : > { %v1156_v32 = vpop.permute.xlu1 %1155 }
 0x2e0   : > { %v1197_v18 = vsel %vm1107_vm1, %v1156_v32, 0.0 }
 0x2e1   : > { %v1176_v51 = vpop.permute.xlu0 %1175 }
 0x2e2   : > { %v1213_v35 = vpop.permute.xlu2 %1212  ;;  %v1201_v58 = vsel %vm1107_vm1, %v1176_v51, 0.0 }
 0x2e3   : > { %v1286_v23 = vsel %vm1204_vm0, %v1213_v35, %v1189_v13 }
 0x2e4   : > { %1302 = vst [vmem:[%s2525_s26 + $0x8] sm:$0xff] %v1286_v23 }
 0x2e7   : > { %v1171_v30 = vpop.permute.xlu1 %1170 }
 0x2e8   : > { %v1200_v55 = vsel %vm1107_vm1, %v1171_v30, 0.0 }
 0x2e9   : > { %v1208_v34 = vpop.permute.xlu0 %1207 }
 0x2ea   : > { %v1285_v62 = vsel %vm1204_vm0, %v1208_v34, %v1188_v22  ;;  %v1228_v10 = vpop.permute.xlu2 %1227 }
 0x2eb   : > { %1301 = vst [vmem:[%s2525_s26] sm:$0xff] %v1285_v62  ;;  %v1289_v1 = vsel %vm1204_vm0, %v1228_v10, %v1192_v8 }
 0x2ec   : > { %1305 = vst [vmem:[%s2525_s26 + $0x20] sm:$0xff] %v1289_v1 }
 0x2ef   : > { %v1186_v61 = vpop.permute.xlu1 %1185 }
 0x2f0   : > { %v1203_v4 = vsel %vm1107_vm1, %v1186_v61, 0.0 }
 0x2f1   : > { %v1223_v36 = vpop.permute.xlu0 %1222 }
 0x2f2   : > { %v1288_v28 = vsel %vm1204_vm0, %v1223_v36, %v1191_v17  ;;  %v1243_v29 = vpop.permute.xlu2 %1242 }
 0x2f3   : > { %1304 = vst [vmem:[%s2525_s26 + $0x18] sm:$0xff] %v1288_v28  ;;  %v1292_v52 = vsel %vm1204_vm0, %v1243_v29, %v1195_v53 }
 0x2f4   : > { %1308 = vst [vmem:[%s2525_s26 + $0x38] sm:$0xff] %v1292_v52 }
 0x2f7   : > { %v1218_v50 = vpop.permute.xlu1 %1217 }
 0x2f8   : > { %v1287_v41 = vsel %vm1204_vm0, %v1218_v50, %v1190_v11 }
 0x2f9   : > { %1303 = vst [vmem:[%s2525_s26 + $0x10] sm:$0xff] %v1287_v41  ;;  %v1238_v54 = vpop.permute.xlu0 %1237 }
 0x2fa   : > { %v1291_v44 = vsel %vm1204_vm0, %v1238_v54, %v1194_v49  ;;  %v1258_v59 = vpop.permute.xlu2 %1257 }
 0x2fb   : > { %1307 = vst [vmem:[%s2525_s26 + $0x30] sm:$0xff] %v1291_v44  ;;  %v1295_v57 = vsel %vm1204_vm0, %v1258_v59, %v1198_v15 }
 0x2fc   : > { %1311 = vst [vmem:[%s2525_s26 + $0x50] sm:$0xff] %v1295_v57 }
 0x2ff   : > { %v1233_v14 = vpop.permute.xlu1 %1232 }
 0x300   : > { %v1290_v37 = vsel %vm1204_vm0, %v1233_v14, %v1193_v45 }
 0x301   : > { %1306 = vst [vmem:[%s2525_s26 + $0x28] sm:$0xff] %v1290_v37  ;;  %v1253_v33 = vpop.permute.xlu0 %1252 }
 0x302   : > { %v1294_v39 = vsel %vm1204_vm0, %v1253_v33, %v1197_v18  ;;  %v1273_v3 = vpop.permute.xlu2 %1272 }
 0x303   : > { %1310 = vst [vmem:[%s2525_s26 + $0x48] sm:$0xff] %v1294_v39  ;;  %v1298_v6 = vsel %vm1204_vm0, %v1273_v3, %v1201_v58 }
 0x304   : > { %1314 = vst [vmem:[%s2525_s26 + $0x68] sm:$0xff] %v1298_v6 }
 0x307   : > { %v1248_v38 = vpop.permute.xlu1 %1247 }
 0x308   : > { %v1293_v9 = vsel %vm1204_vm0, %v1248_v38, %v1196_v12 }
 0x309   : > { %1309 = vst [vmem:[%s2525_s26 + $0x40] sm:$0xff] %v1293_v9  ;;  %v1268_v7 = vpop.permute.xlu0 %1267 }
 0x30a   : > { %v1297_v48 = vsel %vm1204_vm0, %v1268_v7, %v1200_v55 }
 0x30b   : > { %1313 = vst [vmem:[%s2525_s26 + $0x60] sm:$0xff] %v1297_v48 }
 0x30f   : > { %v1263_v31 = vpop.permute.xlu1 %1262 }
 0x310   : > { %v1296_v56 = vsel %vm1204_vm0, %v1263_v31, %v1199_v21 }
 0x311   : > { %1312 = vst [vmem:[%s2525_s26 + $0x58] sm:$0xff] %v1296_v56  ;;  %v1283_v47 = vpop.permute.xlu0 %1282 }
 0x312   : > { %v1300_v5 = vsel %vm1204_vm0, %v1283_v47, %v1203_v4 }
 0x313   : > { %1316 = vst [vmem:[%s2525_s26 + $0x78] sm:$0xff] %v1300_v5 }
 0x317   : > { %v1278_v2 = vpop.permute.xlu1 %1277 }
 0x318   : > { %v1299_v40 = vsel %vm1204_vm0, %v1278_v2, %v1202_v26 }
 0x319   : > { %1315 = vst [vmem:[%s2525_s26 + $0x70] sm:$0xff] %v1299_v40 }
 0x31a   : > { %1599 = shalt.err (!%p1596_p3)
}
 0x31b   : > { %s1641_s21 = smov 128   ;;  %s1642_s22 = smov 8  }
 0x31c   : > { %1408 = dma.vmem_to_hbm [thread:$0]  (%p1696_p5), %s1331_s13, 2048, %s1333_s3, %s1318_s4, %s1641_s21, %s1641_s21, %s1642_s22  }
 0x31d PF: > { %p1414_p4 = scmp.ge.s32.totalorder %s1634_s12, 2  ;;  %s1347_s23 = sand.u32 1, %s1622_s9  }
 0x31e   : > { %s1348_s24 = scalar_lea.sflag [#allocation3], %s1347_s23 }
 0x31f   : > { %p1411_p7 = pnand %p1414_p4, %p1700_p6 }
 0x321   : > { %p1412_p8 = pneg %p1411_p7 }
 0x323   : > { %1617 = dma.done.wait (%p1412_p8), %s1348_s24, 2048  }
 0x324   : > { %1619 = vsyncadd (%p1412_p8), %s1348_s24, 4294965248  ;;  %p12_p9 = scmp.ge.s32.totalorder %s1683_s15, 10   ;;  %s2670_s9 = smov %s1626_s10 }
 0x325   : > { %s2671_s10 = smov %s1630_s11  ;;  %s2672_s11 = smov %s1694_s18 }
 0x326   : > { %s2673_s12 = smov %s1683_s15  ;;  %14 = sbr.rel (!%p12_p9) target bundleno = 3 (0x3), region = 63 }
 0x32b   :  { %1354 = vsyncpa [#allocation3], 1 }
 0x32c   :  { %1356 = vsyncpa [#allocation3 + $0x1], 1 }

</bundles_post_ra>
